<compile_context>
chip_gen: v7x
topology: tpu7x:2x2x1
jax: 0.10.0
libtpu: 0.0.40
codegen_flags: <defaults>
</compile_context>

<pallas_src>
import jax
import jax.numpy as jnp
from jax.experimental import pallas as pl
from jax.experimental.pallas import tpu as pltpu

HID1 = 512
CODE = 400        # logical code width (matches the torch module)
CODE_PAD = 512    # padded to a multiple of 128 lanes / 256-wide MXU
HID2 = 512

_BATCH_TILE = 256  # batch tile used only when B > _BATCH_TILE


def _ae_kernel(x_ref,
               w1_ref, b1_ref,
               w2_ref, b2_ref,
               w3_ref, b3_ref,
               w4_ref, b4_ref,
               recon_ref, code_ref):
    bf16 = jnp.bfloat16
    x = x_ref[...].astype(bf16)

    # encoder_hidden_layer + relu
    h = jnp.dot(x, w1_ref[...], preferred_element_type=jnp.float32)
    h = jnp.maximum(h + b1_ref[...], 0.0)

    # encoder_output_layer + relu -> code (padded to CODE_PAD lanes; pads are 0)
    code = jnp.dot(h.astype(bf16), w2_ref[...], preferred_element_type=jnp.float32)
    code = jnp.maximum(code + b2_ref[...], 0.0)

    # decoder_hidden_layer + relu
    h2 = jnp.dot(code.astype(bf16), w3_ref[...], preferred_element_type=jnp.float32)
    h2 = jnp.maximum(h2 + b3_ref[...], 0.0)

    # decoder_output_layer + relu -> reconstruction
    out = jnp.dot(h2.astype(bf16), w4_ref[...], preferred_element_type=jnp.float32)
    out = jnp.maximum(out + b4_ref[...], 0.0)

    recon_ref[...] = out.astype(recon_ref.dtype)
    code_ref[...] = code.astype(code_ref.dtype)


def _cost_estimate(b_rows, d):
    flops = 2 * b_rows * (d * HID1 + HID1 * CODE_PAD + CODE_PAD * HID2 + HID2 * d)
    weight_bytes = 2 * (d * HID1 + HID1 * CODE_PAD + CODE_PAD * HID2 + HID2 * d)  # bf16
    bias_bytes = 4 * (HID1 + CODE_PAD + HID2 + d)                                 # f32
    act_bytes = 4 * b_rows * (d + d + CODE_PAD)                                   # x, recon, code
    return pl.CostEstimate(flops=flops, transcendentals=0,
                           bytes_accessed=weight_bytes + bias_bytes + act_bytes)


def ae_forward(x, kparams):
    """x: [B, D] float32. kparams: packed (bf16, code-padded) params.
    Returns (reconstructed [B, D], code_view [1, B*400])."""
    B, D = x.shape
    w1, b1, w2, b2, w3, b3, w4, b4 = kparams

    if B <= _BATCH_TILE:
        # Whole problem fits in VMEM; single fused invocation, no grid overhead.
        full = lambda shape: pl.BlockSpec(shape, lambda: tuple(0 for _ in shape))
        recon, code_pad = pl.pallas_call(
            _ae_kernel,
            out_shape=(
                jax.ShapeDtypeStruct((B, D), jnp.float32),
                jax.ShapeDtypeStruct((B, CODE_PAD), jnp.float32),
            ),
            grid=(),
            in_specs=[
                full((B, D)),
                full((D, HID1)), full((1, HID1)),
                full((HID1, CODE_PAD)), full((1, CODE_PAD)),
                full((CODE_PAD, HID2)), full((1, HID2)),
                full((HID2, D)), full((1, D)),
            ],
            out_specs=(
                full((B, D)),
                full((B, CODE_PAD)),
            ),
            cost_estimate=_cost_estimate(B, D),
        )(x, w1, b1, w2, b2, w3, b3, w4, b4)
    else:
        # Large-batch path: 1-D grid over batch tiles; weights stay resident in
        # VMEM (index_map always (0, 0)); batch axis "parallel" so v7x's second
        # TensorCore takes half the tiles.
        TB = _BATCH_TILE
        nb = pl.cdiv(B, TB)
        Bp = nb * TB
        x_p = jnp.pad(x, ((0, Bp - B), (0, 0))) if Bp != B else x
        tiled = lambda shape: pl.BlockSpec(shape, lambda i: (i, 0))
        resident = lambda shape: pl.BlockSpec(shape, lambda i: (0, 0))
        recon, code_pad = pl.pallas_call(
            _ae_kernel,
            out_shape=(
                jax.ShapeDtypeStruct((Bp, D), jnp.float32),
                jax.ShapeDtypeStruct((Bp, CODE_PAD), jnp.float32),
            ),
            grid=(nb,),
            in_specs=[
                tiled((TB, D)),
                resident((D, HID1)), resident((1, HID1)),
                resident((HID1, CODE_PAD)), resident((1, CODE_PAD)),
                resident((CODE_PAD, HID2)), resident((1, HID2)),
                resident((HID2, D)), resident((1, D)),
            ],
            out_specs=(
                tiled((TB, D)),
                tiled((TB, CODE_PAD)),
            ),
            compiler_params=pltpu.CompilerParams(
                dimension_semantics=("parallel",)),
            cost_estimate=_cost_estimate(Bp, D),
        )(x_p, w1, b1, w2, b2, w3, b3, w4, b4)
        recon = recon[:B]
        code_pad = code_pad[:B]

    # code.view(-1, code.shape[0] * 400) in torch == reshape to [1, B*400]
    code = code_pad[:, :CODE]
    return recon, code.reshape(-1, B * CODE)


def init_params(key, input_shape):
    """Deterministic init matching torch.nn.Linear's U(-1/sqrt(fan_in), 1/sqrt(fan_in)).
    Weights stored as [in, out] (transposed vs. torch's [out, in])."""
    dims = [(input_shape, HID1), (HID1, CODE), (CODE, HID2), (HID2, input_shape)]
    params = []
    for fan_in, fan_out in dims:
        key, kw, kb = jax.random.split(key, 3)
        bound = 1.0 / jnp.sqrt(fan_in)
        w = jax.random.uniform(kw, (fan_in, fan_out), jnp.float32, -bound, bound)
        b = jax.random.uniform(kb, (1, fan_out), jnp.float32, -bound, bound)
        params += [w, b]
    return tuple(params)


def pack_params(params):
    """Pad the 400-wide code dim to 512 (zero pad) and cast weights to bf16."""
    w1, b1, w2, b2, w3, b3, w4, b4 = params
    bf = jnp.bfloat16
    w2p = jnp.zeros((HID1, CODE_PAD), jnp.float32).at[:, :CODE].set(w2)
    b2p = jnp.zeros((1, CODE_PAD), jnp.float32).at[:, :CODE].set(b2)
    w3p = jnp.zeros((CODE_PAD, HID2), jnp.float32).at[:CODE, :].set(w3)
    return (w1.astype(bf), b1,
            w2p.astype(bf), b2p,
            w3p.astype(bf), b3,
            w4.astype(bf), b4)


def reference_forward(x, params):
    """Pure-JAX reference mirroring the kernel's numerics (bf16 matmul inputs,
    f32 accumulation), using the original unpadded f32 params."""
    w1, b1, w2, b2, w3, b3, w4, b4 = params
    bf = jnp.bfloat16

    def lin_relu(a, w, b):
        y = jnp.dot(a.astype(bf), w.astype(bf),
                    preferred_element_type=jnp.float32) + b
        return jnp.maximum(y, 0.0)

    h = lin_relu(x, w1, b1)
    code = lin_relu(h, w2, b2)
    h2 = lin_relu(code, w3, b3)
    out = lin_relu(h2, w4, b4)
    return out, code.reshape(-1, x.shape[0] * CODE)


if __name__ == "__main__":
    B = 8              # batch
    INPUT_SHAPE = 256  # kwargs['input_shape']

    key = jax.random.PRNGKey(0)
    key, kx = jax.random.split(key)
    x = jax.random.normal(kx, (B, INPUT_SHAPE), jnp.float32)

    params = init_params(key, INPUT_SHAPE)   # torch-equivalent f32 params
    kparams = pack_params(params)            # bf16 + code-padded kernel params

    recon, code_view = jax.jit(ae_forward)(x, kparams)
    recon = jax.block_until_ready(recon)
    code_view = jax.block_until_ready(code_view)

    # sanity check against a pure-JAX reference with matching bf16 numerics
    recon_ref, code_ref = reference_forward(x, params)
    assert recon.shape == (B, INPUT_SHAPE)
    assert code_view.shape == (1, B * CODE)
    assert jnp.allclose(recon, recon_ref, atol=1e-2, rtol=1e-2)
    assert jnp.allclose(code_view, code_ref, atol=1e-2, rtol=1e-2)

    print("KERNEL_OK")
</pallas_src>

<mosaic_0001>
module attributes {stable_mosaic.version = 11 : i64} {
  func.func @_ae_kernel(%arg0: memref<8x256xf32, #tpu.memory_space<vmem>>, %arg1: memref<256x512xbf16, #tpu.memory_space<vmem>>, %arg2: memref<1x512xf32, #tpu.memory_space<vmem>>, %arg3: memref<512x512xbf16, #tpu.memory_space<vmem>>, %arg4: memref<1x512xf32, #tpu.memory_space<vmem>>, %arg5: memref<512x512xbf16, #tpu.memory_space<vmem>>, %arg6: memref<1x512xf32, #tpu.memory_space<vmem>>, %arg7: memref<512x256xbf16, #tpu.memory_space<vmem>>, %arg8: memref<1x256xf32, #tpu.memory_space<vmem>>, %arg9: memref<8x256xf32, #tpu.memory_space<vmem>>, %arg10: memref<8x512xf32, #tpu.memory_space<vmem>>) attributes {dimension_semantics = [], scalar_prefetch = 0 : i64, scratch_operands = 0 : i64, tpu.core_type = #tpu.core_type<tc>} {
    %c0 = arith.constant 0 : index
    %c0_0 = arith.constant 0 : index
    %0 = vector.load %arg0[%c0, %c0_0] : memref<8x256xf32, #tpu.memory_space<vmem>>, vector<8x256xf32>
    %1 = arith.truncf %0 : vector<8x256xf32> to vector<8x256xbf16>
    %c0_1 = arith.constant 0 : index
    %c0_2 = arith.constant 0 : index
    %2 = vector.load %arg1[%c0_1, %c0_2] : memref<256x512xbf16, #tpu.memory_space<vmem>>, vector<256x512xbf16>
    %cst = arith.constant dense<0.000000e+00> : vector<8x512xf32>
    %3 = tpu.matmul %1, %2, %cst {dimension_numbers = #tpu.dot_dimension_numbers<[1], [0], [0], [1], [0, 0, 1, 1], [], []>} : vector<8x256xbf16>, vector<256x512xbf16>, vector<8x512xf32> -> vector<8x512xf32>
    %c0_3 = arith.constant 0 : index
    %c0_4 = arith.constant 0 : index
    %4 = vector.load %arg2[%c0_3, %c0_4] : memref<1x512xf32, #tpu.memory_space<vmem>>, vector<1x512xf32>
    %5 = vector.broadcast %4 : vector<1x512xf32> to vector<8x512xf32>
    %6 = arith.addf %3, %5 : vector<8x512xf32>
    %cst_5 = arith.constant 0.000000e+00 : f32
    %7 = vector.broadcast %cst_5 : f32 to vector<8x512xf32>
    %8 = arith.maximumf %6, %7 : vector<8x512xf32>
    %9 = arith.truncf %8 : vector<8x512xf32> to vector<8x512xbf16>
    %c0_6 = arith.constant 0 : index
    %c0_7 = arith.constant 0 : index
    %10 = vector.load %arg3[%c0_6, %c0_7] : memref<512x512xbf16, #tpu.memory_space<vmem>>, vector<512x512xbf16>
    %cst_8 = arith.constant dense<0.000000e+00> : vector<8x512xf32>
    %11 = tpu.matmul %9, %10, %cst_8 {dimension_numbers = #tpu.dot_dimension_numbers<[1], [0], [0], [1], [0, 0, 1, 1], [], []>} : vector<8x512xbf16>, vector<512x512xbf16>, vector<8x512xf32> -> vector<8x512xf32>
    %c0_9 = arith.constant 0 : index
    %c0_10 = arith.constant 0 : index
    %12 = vector.load %arg4[%c0_9, %c0_10] : memref<1x512xf32, #tpu.memory_space<vmem>>, vector<1x512xf32>
    %13 = vector.broadcast %12 : vector<1x512xf32> to vector<8x512xf32>
    %14 = arith.addf %11, %13 : vector<8x512xf32>
    %cst_11 = arith.constant 0.000000e+00 : f32
    %15 = vector.broadcast %cst_11 : f32 to vector<8x512xf32>
    %16 = arith.maximumf %14, %15 : vector<8x512xf32>
    %17 = arith.truncf %16 : vector<8x512xf32> to vector<8x512xbf16>
    %c0_12 = arith.constant 0 : index
    %c0_13 = arith.constant 0 : index
    %18 = vector.load %arg5[%c0_12, %c0_13] : memref<512x512xbf16, #tpu.memory_space<vmem>>, vector<512x512xbf16>
    %cst_14 = arith.constant dense<0.000000e+00> : vector<8x512xf32>
    %19 = tpu.matmul %17, %18, %cst_14 {dimension_numbers = #tpu.dot_dimension_numbers<[1], [0], [0], [1], [0, 0, 1, 1], [], []>} : vector<8x512xbf16>, vector<512x512xbf16>, vector<8x512xf32> -> vector<8x512xf32>
    %c0_15 = arith.constant 0 : index
    %c0_16 = arith.constant 0 : index
    %20 = vector.load %arg6[%c0_15, %c0_16] : memref<1x512xf32, #tpu.memory_space<vmem>>, vector<1x512xf32>
    %21 = vector.broadcast %20 : vector<1x512xf32> to vector<8x512xf32>
    %22 = arith.addf %19, %21 : vector<8x512xf32>
    %cst_17 = arith.constant 0.000000e+00 : f32
    %23 = vector.broadcast %cst_17 : f32 to vector<8x512xf32>
    %24 = arith.maximumf %22, %23 : vector<8x512xf32>
    %25 = arith.truncf %24 : vector<8x512xf32> to vector<8x512xbf16>
    %c0_18 = arith.constant 0 : index
    %c0_19 = arith.constant 0 : index
    %26 = vector.load %arg7[%c0_18, %c0_19] : memref<512x256xbf16, #tpu.memory_space<vmem>>, vector<512x256xbf16>
    %cst_20 = arith.constant dense<0.000000e+00> : vector<8x256xf32>
    %27 = tpu.matmul %25, %26, %cst_20 {dimension_numbers = #tpu.dot_dimension_numbers<[1], [0], [0], [1], [0, 0, 1, 1], [], []>} : vector<8x512xbf16>, vector<512x256xbf16>, vector<8x256xf32> -> vector<8x256xf32>
    %c0_21 = arith.constant 0 : index
    %c0_22 = arith.constant 0 : index
    %28 = vector.load %arg8[%c0_21, %c0_22] : memref<1x256xf32, #tpu.memory_space<vmem>>, vector<1x256xf32>
    %29 = vector.broadcast %28 : vector<1x256xf32> to vector<8x256xf32>
    %30 = arith.addf %27, %29 : vector<8x256xf32>
    %cst_23 = arith.constant 0.000000e+00 : f32
    %31 = vector.broadcast %cst_23 : f32 to vector<8x256xf32>
    %32 = arith.maximumf %30, %31 : vector<8x256xf32>
    %c0_24 = arith.constant 0 : index
    %c0_25 = arith.constant 0 : index
    %33 = vector.load %arg9[%c0_24, %c0_25] : memref<8x256xf32, #tpu.memory_space<vmem>>, vector<8x256xf32>
    tpu.vector_store %arg9[%c0_24, %c0_25], %32 {strides = array<i32>} : memref<8x256xf32, #tpu.memory_space<vmem>>, vector<8x256xf32>,
    %c0_26 = arith.constant 0 : index
    %c0_27 = arith.constant 0 : index
    %34 = vector.load %arg10[%c0_26, %c0_27] : memref<8x512xf32, #tpu.memory_space<vmem>>, vector<8x512xf32>
    tpu.vector_store %arg10[%c0_26, %c0_27], %16 {strides = array<i32>} : memref<8x512xf32, #tpu.memory_space<vmem>>, vector<8x512xf32>,
    return
  }
}

</mosaic_0001>

<bundles_post_ra>
// kernel: ae_forward.1
= control target key start
LH: loop header
LB: loop body
LE: loop exit
PB: predicated region body
PF: predicated region fallthrough
CT: control target
= control target key end

     0   :  { %16 = vsyncpa [#allocation3], 0  ;;  %s4398_s0 = inlined_call_operand.hbm [shape: f32[8,256], index: 0, kind: input, shape index: {}]   ;;  %s4399_s1 = inlined_call_operand.hbm [shape: bf16[256,512], index: 1, kind: input, shape index: {}]   ;;  %s4400_s2 = inlined_call_operand.vmem [shape: f32[1,512], index: 2, kind: input, shape index: {}]   ;;  %s4401_s3 = inlined_call_operand.hbm [shape: bf16[512,512], index: 3, kind: input, shape index: {}]   ;;  %s4402_s4 = inlined_call_operand.vmem [shape: f32[1,512], index: 4, kind: input, shape index: {}]   ;;  %s4403_s5 = inlined_call_operand.hbm [shape: bf16[512,512], index: 5, kind: input, shape index: {}]   ;;  %s4404_s6 = inlined_call_operand.vmem [shape: f32[1,512], index: 6, kind: input, shape index: {}]   ;;  %s4405_s7 = inlined_call_operand.hbm [shape: bf16[512,256], index: 7, kind: input, shape index: {}]   ;;  %s4406_s8 = inlined_call_operand.vmem [shape: f32[1,256], index: 8, kind: input, shape index: {}]   ;;  %s4407_s9 = inlined_call_operand.hbm [shape: f32[8,256], index: 9, kind: output, shape index: {0}]   ;;  %s4408_s10 = inlined_call_operand.vmem [shape: f32[8,512], index: 10, kind: output, shape index: {1}]  }
   0x1   :  { %17 = vsyncpa [#allocation6], 0 }
   0x2   :  { %18 = vsyncpa [#allocation9], 0 }
   0x3   :  { %19 = vsyncpa [#allocation4], 0  ;;  %s4172_s13 = smov [#allocation5]   ;;  %s4032_s17 = scalar_lea.hbm %s4399_s1, 8192 }
   0x4   :  { %s35_s14 = sshll.u32 %s4172_s13, 4  ;;  %p4033_p0 = scmp.ne.s32.totalorder %s4399_s1, %s4032_s17  ;;  %s36_s14 = int_to_ptr.vmem [resolvable:$true] %s35_s14 }
   0x5   :  { %p4036_p1 = scmp.lt.u32.totalorder %s4032_s17, %s4399_s1 }
   0x7   :  { %p4038_p2 = pnand %p4036_p1, %p4033_p0 }
   0x9   :  { %4041 = shalt.err (!%p4038_p2)
}
   0xa   :  { %s4042_s22 = scalar_lea.vmem %s36_s14, 8192  ;;  %p4047_p4 = scmp.lt.s32.totalorder %s36_s14, %s36_s14 }
   0xb   :  { %p4043_p3 = scmp.ne.s32.totalorder %s36_s14, %s4042_s22  ;;  %p4048_p5 = scmp.lt.s32.totalorder %s4042_s22, %s4042_s22 }
   0xd   :  { %p4049_p6 = por %p4048_p5, %p4047_p4 }
   0xf   :  { %p4050_p7 = pnand %p4049_p6, %p4043_p3 }
  0x11   :  { %4053 = shalt.err (!%p4050_p7)
}
  0x12   :  { %s4173_s23 = smov 256   ;;  %s4174_s24 = smov 16  }
  0x13   :  { %41 = dma.hbm_to_vmem [thread:$0]  %s4399_s1, 8192, %s36_s14, [#allocation6], %s4173_s23, %s4173_s23, %s4174_s24  }
  0x14   :  { %s4175_s27 = smov [#allocation8]   ;;  %s4176_s29 = smov [#allocation2]  }
  0x15   :  { %s63_s28 = sshll.u32 %s4175_s27, 4  ;;  %s26_s30 = sshll.u32 %s4176_s29, 4  ;;  %s64_s28 = int_to_ptr.vmem [resolvable:$true] %s63_s28  ;;  %s27_s30 = int_to_ptr.vmem [resolvable:$true] %s26_s30 }
  0x16   :  { %s4054_s13 = scalar_lea.hbm %s4403_s5, 16384 }
  0x17   :  { %p4055_p8 = scmp.ne.s32.totalorder %s4403_s5, %s4054_s13  ;;  %p4058_p9 = scmp.lt.u32.totalorder %s4054_s13, %s4403_s5 }
  0x19   :  { %p4060_p10 = pnand %p4058_p9, %p4055_p8 }
  0x1b   :  { %4063 = shalt.err (!%p4060_p10)
}
  0x1c   :  { %s4064_s1 = scalar_lea.vmem %s64_s28, 16384  ;;  %p4069_p12 = scmp.lt.s32.totalorder %s64_s28, %s64_s28 }
  0x1d   :  { %p4065_p11 = scmp.ne.s32.totalorder %s64_s28, %s4064_s1  ;;  %p4070_p13 = scmp.lt.s32.totalorder %s4064_s1, %s4064_s1 }
  0x1f   :  { %p4071_p0 = por %p4070_p13, %p4069_p12 }
  0x21   :  { %p4072_p1 = pnand %p4071_p0, %p4065_p11 }
  0x23   :  { %4075 = shalt.err (!%p4072_p1)
}
  0x24   :  { %69 = dma.hbm_to_vmem [thread:$0]  %s4403_s5, 16384, %s64_s28, [#allocation9], %s4173_s23, %s4173_s23, %s4174_s24  }
  0x25   :  { %s4076_s22 = scalar_lea.hbm %s4398_s0, 256 }
  0x26   :  { %p4077_p2 = scmp.ne.s32.totalorder %s4398_s0, %s4076_s22  ;;  %p4080_p3 = scmp.lt.u32.totalorder %s4076_s22, %s4398_s0 }
  0x28   :  { %p4082_p4 = pnand %p4080_p3, %p4077_p2 }
  0x2a   :  { %4085 = shalt.err (!%p4082_p4)
}
  0x2b   :  { %s4086_s11 = scalar_lea.vmem %s27_s30, 256  ;;  %p4091_p6 = scmp.lt.s32.totalorder %s27_s30, %s27_s30 }
  0x2c   :  { %p4087_p5 = scmp.ne.s32.totalorder %s27_s30, %s4086_s11  ;;  %p4092_p7 = scmp.lt.s32.totalorder %s4086_s11, %s4086_s11 }
  0x2e   :  { %p4093_p8 = por %p4092_p7, %p4091_p6 }
  0x30   :  { %p4094_p9 = pnand %p4093_p8, %p4087_p5 }
  0x32   :  { %4097 = shalt.err (!%p4094_p9)
}
  0x33   :  { %29 = dma.hbm_to_vmem [thread:$0]  %s4398_s0, 256, %s27_s30, [#allocation3]  }
  0x34   :  { %s4177_s12 = smov [#allocation7]   ;;  %s4178_s15 = smov [#allocation10]  }
  0x35   :  { %s49_s13 = sshll.u32 %s4177_s12, 4  ;;  %s77_s16 = sshll.u32 %s4178_s15, 4  ;;  %s50_s13 = int_to_ptr.vmem [resolvable:$true] %s49_s13  ;;  %s78_s16 = int_to_ptr.vmem [resolvable:$true] %s77_s16 }
  0x36   :  { %s4098_s1 = scalar_lea.hbm %s4401_s3, 16384 }
  0x37   :  { %p4099_p10 = scmp.ne.s32.totalorder %s4401_s3, %s4098_s1  ;;  %p4102_p11 = scmp.lt.u32.totalorder %s4098_s1, %s4401_s3 }
  0x39   :  { %p4104_p12 = pnand %p4102_p11, %p4099_p10 }
  0x3b   :  { %4107 = shalt.err (!%p4104_p12)
}
  0x3c   :  { %s4108_s0 = scalar_lea.vmem %s50_s13, 16384  ;;  %p4113_p0 = scmp.lt.s32.totalorder %s50_s13, %s50_s13 }
  0x3d   :  { %p4109_p13 = scmp.ne.s32.totalorder %s50_s13, %s4108_s0  ;;  %p4114_p1 = scmp.lt.s32.totalorder %s4108_s0, %s4108_s0 }
  0x3f   :  { %p4115_p2 = por %p4114_p1, %p4113_p0 }
  0x41   :  { %p4116_p3 = pnand %p4115_p2, %p4109_p13 }
  0x43   :  { %4119 = shalt.err (!%p4116_p3)
}
  0x44   :  { %55 = dma.hbm_to_vmem [thread:$0]  %s4401_s3, 16384, %s50_s13, [#allocation6], %s4173_s23, %s4173_s23, %s4174_s24  }
  0x45   :  { %s4120_s27 = scalar_lea.hbm %s4405_s7, 8192 }
  0x46   :  { %p4121_p4 = scmp.ne.s32.totalorder %s4405_s7, %s4120_s27  ;;  %p4124_p5 = scmp.lt.u32.totalorder %s4120_s27, %s4405_s7 }
  0x48   :  { %p4126_p6 = pnand %p4124_p5, %p4121_p4 }
  0x4a   :  { %4129 = shalt.err (!%p4126_p6)
}
  0x4b   :  { %s4130_s12 = scalar_lea.vmem %s78_s16, 8192  ;;  %p4135_p8 = scmp.lt.s32.totalorder %s78_s16, %s78_s16 }
  0x4c   :  { %p4131_p7 = scmp.ne.s32.totalorder %s78_s16, %s4130_s12  ;;  %p4136_p9 = scmp.lt.s32.totalorder %s4130_s12, %s4130_s12 }
  0x4e   :  { %p4137_p10 = por %p4136_p9, %p4135_p8 }
  0x50   :  { %p4138_p11 = pnand %p4137_p10, %p4131_p7 }
  0x52   :  { %4141 = shalt.err (!%p4138_p11)
}
  0x53   :  { %s4179_s3 = smov 128   ;;  %s4180_s23 = smov 8  }
  0x54   :  { %83 = dma.hbm_to_vmem [thread:$0]  %s4405_s7, 8192, %s78_s16, [#allocation9], %s4179_s3, %s4179_s3, %s4180_s23  }
  0x55   :  { %4164 = dma.done.wait [#allocation3], 256  }
  0x56   :  { %4165 = vsyncadd [#allocation3], 4294967040 }
  0x57   :  { %4166 = dma.done.wait [#allocation6], 24576  }
  0x58   :  { %4167 = vsyncadd [#allocation6], 4294942720 }
  0x59   :  { %4168 = dma.done.wait [#allocation9], 24576  }
  0x5a   :  { %4169 = vsyncadd [#allocation9], 4294942720  ;;  %v3456_v0 = vld [vmem:[#allocation5 + $0x4] ss:$16 sps:$4 sm:$0xff]   ;;  %v3458_v1 = vld [vmem:[#allocation5] ss:$16 sps:$4 sm:$0xff]  }
  0x5b   :  { %511 = vmatprep.subr.bf16.mxu1 %v3456_v0  ;;  %v3459_v2 = vld [vmem:[#allocation5 + $0x24] ss:$16 sps:$4 sm:$0xff]   ;;  %v3461_v3 = vld [vmem:[#allocation5 + $0x20] ss:$16 sps:$4 sm:$0xff]   ;;  %v102_v13 = vld [vmem:[#allocation2 + $0x8] sm:$0xff]  ;;  %s4181_s22 = smov [#allocation11]  }
  0x5c   :  { %512 = vmatpush1.bf16.msra.mxu1 %v3458_v1  ;;  %v3462_v4 = vld [vmem:[#allocation5 + $0x44] ss:$16 sps:$4 sm:$0xff]   ;;  %v3464_v5 = vld [vmem:[#allocation5 + $0x40] ss:$16 sps:$4 sm:$0xff]   ;;  %v4306_v14 = vpack.c.bf16 %v102_v13, %v102_v13  ;;  %v3506_v44 = vld [vmem:[#allocation5 + $0xc] ss:$16 sps:$4 sm:$0xff]  }
  0x5d   :  { %513 = vmatprep.subr.bf16.mxu1 %v3459_v2  ;;  %v3465_v6 = vld [vmem:[#allocation5 + $0x64] ss:$16 sps:$4 sm:$0xff]   ;;  %v3467_v7 = vld [vmem:[#allocation5 + $0x60] ss:$16 sps:$4 sm:$0xff]   ;;  %v3504_v48 = vld [vmem:[#allocation5 + $0x8] ss:$16 sps:$4 sm:$0xff]  }
  0x5e   :  { %v3468_v8 = vld [vmem:[#allocation5 + $0x84] ss:$16 sps:$4 sm:$0xff]   ;;  %v3470_v9 = vld [vmem:[#allocation5 + $0x80] ss:$16 sps:$4 sm:$0xff]   ;;  %543 = vmatprep.mubr.bf16.mxu1 %v4306_v14  ;;  %v3509_v49 = vld [vmem:[#allocation5 + $0x2c] ss:$16 sps:$4 sm:$0xff]  }
  0x5f   :  { %v3471_v10 = vld [vmem:[#allocation5 + $0xa4] ss:$16 sps:$4 sm:$0xff]   ;;  %v3473_v11 = vld [vmem:[#allocation5 + $0xa0] ss:$16 sps:$4 sm:$0xff]   ;;  %v3507_v52 = vld [vmem:[#allocation5 + $0x28] ss:$16 sps:$4 sm:$0xff]  }
  0x60   :  { %514 = vmatpush1.bf16.msra.mxu1 %v3461_v3  ;;  %v3474_v12 = vld [vmem:[#allocation5 + $0xc4] ss:$16 sps:$4 sm:$0xff]   ;;  %v3476_v15 = vld [vmem:[#allocation5 + $0xc0] ss:$16 sps:$4 sm:$0xff]   ;;  %v3512_v53 = vld [vmem:[#allocation5 + $0x4c] ss:$16 sps:$4 sm:$0xff]  }
  0x61   :  { %515 = vmatprep.subr.bf16.mxu1 %v3462_v4  ;;  %v3477_v16 = vld [vmem:[#allocation5 + $0xe4] ss:$16 sps:$4 sm:$0xff]   ;;  %v3479_v17 = vld [vmem:[#allocation5 + $0xe0] ss:$16 sps:$4 sm:$0xff]   ;;  %v3510_v56 = vld [vmem:[#allocation5 + $0x48] ss:$16 sps:$4 sm:$0xff]  }
  0x62   :  { %v3480_v18 = vld [vmem:[#allocation5 + $0x104] ss:$16 sps:$4 sm:$0xff]   ;;  %v3482_v19 = vld [vmem:[#allocation5 + $0x100] ss:$16 sps:$4 sm:$0xff]   ;;  %v3515_v57 = vld [vmem:[#allocation5 + $0x6c] ss:$16 sps:$4 sm:$0xff]  }
  0x63   :  { %v3483_v20 = vld [vmem:[#allocation5 + $0x124] ss:$16 sps:$4 sm:$0xff]   ;;  %v3485_v21 = vld [vmem:[#allocation5 + $0x120] ss:$16 sps:$4 sm:$0xff]   ;;  %v3513_v60 = vld [vmem:[#allocation5 + $0x68] ss:$16 sps:$4 sm:$0xff]  }
  0x64   :  { %516 = vmatpush1.bf16.msra.mxu1 %v3464_v5  ;;  %v3486_v22 = vld [vmem:[#allocation5 + $0x144] ss:$16 sps:$4 sm:$0xff]   ;;  %v3488_v23 = vld [vmem:[#allocation5 + $0x140] ss:$16 sps:$4 sm:$0xff]   ;;  %v3518_v61 = vld [vmem:[#allocation5 + $0x8c] ss:$16 sps:$4 sm:$0xff]  }
  0x65   :  { %517 = vmatprep.subr.bf16.mxu1 %v3465_v6  ;;  %v3489_v24 = vld [vmem:[#allocation5 + $0x164] ss:$16 sps:$4 sm:$0xff]   ;;  %v3491_v25 = vld [vmem:[#allocation5 + $0x160] ss:$16 sps:$4 sm:$0xff]   ;;  %v3516_v0 = vld [vmem:[#allocation5 + $0x88] ss:$16 sps:$4 sm:$0xff]  }
  0x66   :  { %v3492_v26 = vld [vmem:[#allocation5 + $0x184] ss:$16 sps:$4 sm:$0xff]   ;;  %v3557_v28 = vld [vmem:[#allocation7] ss:$16 sps:$4 sm:$0xff]   ;;  %v3521_v1 = vld [vmem:[#allocation5 + $0xac] ss:$16 sps:$4 sm:$0xff]  }
  0x67   :  { %v3552_v27 = vld [vmem:[#allocation7 + $0x4] ss:$16 sps:$4 sm:$0xff]   ;;  %v3494_v30 = vld [vmem:[#allocation5 + $0x180] ss:$16 sps:$4 sm:$0xff]   ;;  %v3519_v4 = vld [vmem:[#allocation5 + $0xa8] ss:$16 sps:$4 sm:$0xff]  }
  0x68   :  { %518 = vmatpush1.bf16.msra.mxu1 %v3467_v7  ;;  %1391 = vmatprep.subr.bf16.mxu0 %v3552_v27  ;;  %v3558_v29 = vld [vmem:[#allocation7 + $0x24] ss:$16 sps:$4 sm:$0xff]   ;;  %v3563_v32 = vld [vmem:[#allocation7 + $0x20] ss:$16 sps:$4 sm:$0xff]   ;;  %v3524_v5 = vld [vmem:[#allocation5 + $0xcc] ss:$16 sps:$4 sm:$0xff]  }
  0x69   :  { %519 = vmatprep.subr.bf16.mxu1 %v3468_v8  ;;  %1392 = vmatpush1.bf16.msra.mxu0 %v3557_v28  ;;  %v3495_v31 = vld [vmem:[#allocation5 + $0x1a4] ss:$16 sps:$4 sm:$0xff]   ;;  %v3497_v34 = vld [vmem:[#allocation5 + $0x1a0] ss:$16 sps:$4 sm:$0xff]   ;;  %v3522_v8 = vld [vmem:[#allocation5 + $0xc8] ss:$16 sps:$4 sm:$0xff]  }
  0x6a   :  { %1393 = vmatprep.subr.bf16.mxu0 %v3558_v29  ;;  %v3564_v33 = vld [vmem:[#allocation7 + $0x44] ss:$16 sps:$4 sm:$0xff]   ;;  %v3569_v36 = vld [vmem:[#allocation7 + $0x40] ss:$16 sps:$4 sm:$0xff]   ;;  %v3530_v13 = vld [vmem:[#allocation5 + $0x10c] ss:$16 sps:$4 sm:$0xff]  }
  0x6b   :  { %v3498_v35 = vld [vmem:[#allocation5 + $0x1c4] ss:$16 sps:$4 sm:$0xff]   ;;  %v3500_v38 = vld [vmem:[#allocation5 + $0x1c0] ss:$16 sps:$4 sm:$0xff]   ;;  %v3543_v27 = vld [vmem:[#allocation5 + $0x1a8] ss:$16 sps:$4 sm:$0xff]  }
  0x6c   :  { %520 = vmatpush1.bf16.msra.mxu1 %v3470_v9  ;;  %v3570_v37 = vld [vmem:[#allocation7 + $0x64] ss:$16 sps:$4 sm:$0xff]   ;;  %v3575_v39 = vld [vmem:[#allocation7 + $0x60] ss:$16 sps:$4 sm:$0xff]   ;;  %v3527_v9 = vld [vmem:[#allocation5 + $0xec] ss:$16 sps:$4 sm:$0xff]  }
  0x6d   :  { %521 = vmatprep.subr.bf16.mxu1 %v3471_v10  ;;  %1394 = vmatpush1.bf16.msra.mxu0 %v3563_v32  ;;  %v3501_v40 = vld [vmem:[#allocation5 + $0x1e4] ss:$16 sps:$4 sm:$0xff]   ;;  %v3503_v42 = vld [vmem:[#allocation5 + $0x1e0] ss:$16 sps:$4 sm:$0xff]   ;;  %v3548_v28 = vld [vmem:[#allocation5 + $0x1cc] ss:$16 sps:$4 sm:$0xff]  }
  0x6e   :  { %1395 = vmatprep.subr.bf16.mxu0 %v3564_v33  ;;  %v3576_v41 = vld [vmem:[#allocation7 + $0x84] ss:$16 sps:$4 sm:$0xff]   ;;  %v3581_v45 = vld [vmem:[#allocation7 + $0x80] ss:$16 sps:$4 sm:$0xff]   ;;  %v3546_v29 = vld [vmem:[#allocation5 + $0x1c8] ss:$16 sps:$4 sm:$0xff]  }
  0x6f   :  { %v101_v43 = vld [vmem:[#allocation2] sm:$0xff]  ;;  %v3556_v32 = vld [vmem:[#allocation7 + $0xc] ss:$16 sps:$4 sm:$0xff]   ;;  %v3554_v33 = vld [vmem:[#allocation7 + $0x8] ss:$16 sps:$4 sm:$0xff]   ;;  %s3017_s25 = sshll.u32 %s4181_s22, 4  ;;  %s3018_s25 = int_to_ptr.vmem [resolvable:$true] %s3017_s25 }
  0x70   :  { %522 = vmatpush1.bf16.msra.mxu1 %v3473_v11  ;;  %v3582_v46 = vld [vmem:[#allocation7 + $0xa4] ss:$16 sps:$4 sm:$0xff]   ;;  %v4309_v47 = vpack.c.bf16 %v101_v43, %v101_v43  ;;  %v3587_v50 = vld [vmem:[#allocation7 + $0xa0] ss:$16 sps:$4 sm:$0xff]   ;;  %v3584_v43 = vld [vmem:[#allocation7 + $0xa8] ss:$16 sps:$4 sm:$0xff]   ;;  %p4147_p13 = scmp.lt.s32.totalorder %s3018_s25, %s3018_s25 }
  0x71   :  { %523 = vmatprep.subr.bf16.mxu1 %v3474_v12  ;;  %1396 = vmatpush1.bf16.msra.mxu0 %v3569_v36  ;;  %v3588_v51 = vld [vmem:[#allocation7 + $0xc4] ss:$16 sps:$4 sm:$0xff]   ;;  %v3593_v54 = vld [vmem:[#allocation7 + $0xc0] ss:$16 sps:$4 sm:$0xff]   ;;  %v3525_v12 = vld [vmem:[#allocation5 + $0xe8] ss:$16 sps:$4 sm:$0xff]  }
  0x72   :  { %1397 = vmatprep.subr.bf16.mxu0 %v3570_v37  ;;  %v3594_v55 = vld [vmem:[#allocation7 + $0xe4] ss:$16 sps:$4 sm:$0xff]   ;;  %v3599_v58 = vld [vmem:[#allocation7 + $0xe0] ss:$16 sps:$4 sm:$0xff]   ;;  %v3568_v36 = vld [vmem:[#allocation7 + $0x4c] ss:$16 sps:$4 sm:$0xff]  }
  0x73   :  { %v3600_v59 = vld [vmem:[#allocation7 + $0x104] ss:$16 sps:$4 sm:$0xff]   ;;  %v3605_v62 = vld [vmem:[#allocation7 + $0x100] ss:$16 sps:$4 sm:$0xff]   ;;  %v3566_v37 = vld [vmem:[#allocation7 + $0x48] ss:$16 sps:$4 sm:$0xff]  }
  0x74   :  { %524 = vmatpush1.bf16.msra.mxu1 %v3476_v15  ;;  %v3606_v63 = vld [vmem:[#allocation7 + $0x124] ss:$16 sps:$4 sm:$0xff]   ;;  %v3611_v2 = vld [vmem:[#allocation7 + $0x120] ss:$16 sps:$4 sm:$0xff]   ;;  %s4142_s26 = scalar_lea.vmem %s3018_s25, 256 }
  0x75   :  { %525 = vmatprep.subr.bf16.mxu1 %v3477_v16  ;;  %1398 = vmatpush1.bf16.msra.mxu0 %v3575_v39  ;;  %v3612_v3 = vld [vmem:[#allocation7 + $0x144] ss:$16 sps:$4 sm:$0xff]   ;;  %v3617_v6 = vld [vmem:[#allocation7 + $0x140] ss:$16 sps:$4 sm:$0xff]   ;;  %v3528_v16 = vld [vmem:[#allocation5 + $0x108] ss:$16 sps:$4 sm:$0xff]   ;;  %p4143_p12 = scmp.ne.s32.totalorder %s3018_s25, %s4142_s26  ;;  %p4148_p0 = scmp.lt.s32.totalorder %s4142_s26, %s4142_s26 }
  0x76   :  { %1399 = vmatprep.subr.bf16.mxu0 %v3576_v41  ;;  %v3618_v7 = vld [vmem:[#allocation7 + $0x164] ss:$16 sps:$4 sm:$0xff]   ;;  %v3623_v10 = vld [vmem:[#allocation7 + $0x160] ss:$16 sps:$4 sm:$0xff]   ;;  %v3572_v39 = vld [vmem:[#allocation7 + $0x68] ss:$16 sps:$4 sm:$0xff]  }
  0x77   :  { %v3624_v11 = vld [vmem:[#allocation7 + $0x184] ss:$16 sps:$4 sm:$0xff]   ;;  %v3578_v41 = vld [vmem:[#allocation7 + $0x88] ss:$16 sps:$4 sm:$0xff]   ;;  %p4149_p1 = por %p4148_p0, %p4147_p13 }
  0x78   :  { %526 = vmatpush1.bf16.msra.mxu1 %v3479_v17  ;;  %v3630_v15 = vld [vmem:[#allocation7 + $0x1a4] ss:$16 sps:$4 sm:$0xff]   ;;  %v3533_v17 = vld [vmem:[#allocation5 + $0x12c] ss:$16 sps:$4 sm:$0xff]  }
  0x79   :  { %527 = vmatprep.subr.bf16.mxu1 %v3480_v18  ;;  %1400 = vmatpush1.bf16.msra.mxu0 %v3581_v45  ;;  %v3635_v18 = vld [vmem:[#allocation7 + $0x1a0] ss:$16 sps:$4 sm:$0xff]   ;;  %v3636_v45 = vld [vmem:[#allocation7 + $0x1c4] ss:$16 sps:$4 sm:$0xff]   ;;  %p4150_p2 = pnand %p4149_p1, %p4143_p12 }
  0x7a   :  { %1401 = vmatprep.subr.bf16.mxu0 %v3582_v46  ;;  %v3590_v46 = vld [vmem:[#allocation7 + $0xc8] ss:$16 sps:$4 sm:$0xff]  }
  0x7c   :  { %528 = vmatpush1.bf16.msra.mxu1 %v3482_v19  ;;  %v3531_v19 = vld [vmem:[#allocation5 + $0x128] ss:$16 sps:$4 sm:$0xff]  }
  0x7d   :  { %529 = vmatprep.subr.bf16.mxu1 %v3483_v20  ;;  %1402 = vmatpush1.bf16.msra.mxu0 %v3587_v50  ;;  %v3536_v20 = vld [vmem:[#allocation5 + $0x14c] ss:$16 sps:$4 sm:$0xff]   ;;  %v3596_v50 = vld [vmem:[#allocation7 + $0xe8] ss:$16 sps:$4 sm:$0xff]  }
  0x7e   :  { %1403 = vmatprep.subr.bf16.mxu0 %v3588_v51  ;;  %v3647_v51 = vld [vmem:[#allocation7 + $0x1e0] ss:$16 sps:$4 sm:$0xff]  }
  0x80   :  { %530 = vmatpush1.bf16.msra.mxu1 %v3485_v21  ;;  %v3534_v21 = vld [vmem:[#allocation5 + $0x148] ss:$16 sps:$4 sm:$0xff]  }
  0x81   :  { %531 = vmatprep.subr.bf16.mxu1 %v3486_v22  ;;  %1404 = vmatpush1.bf16.msra.mxu0 %v3593_v54  ;;  %v3539_v22 = vld [vmem:[#allocation5 + $0x16c] ss:$16 sps:$4 sm:$0xff]   ;;  %v3602_v54 = vld [vmem:[#allocation7 + $0x108] ss:$16 sps:$4 sm:$0xff]  }
  0x82   :  { %1405 = vmatprep.subr.bf16.mxu0 %v3594_v55  ;;  %v3610_v55 = vld [vmem:[#allocation7 + $0x12c] ss:$16 sps:$4 sm:$0xff]  }
  0x84   :  { %532 = vmatpush1.bf16.msra.mxu1 %v3488_v23  ;;  %v3537_v23 = vld [vmem:[#allocation5 + $0x168] ss:$16 sps:$4 sm:$0xff]  }
  0x85   :  { %533 = vmatprep.subr.bf16.mxu1 %v3489_v24  ;;  %1406 = vmatpush1.bf16.msra.mxu0 %v3599_v58  ;;  %v3542_v24 = vld [vmem:[#allocation5 + $0x18c] ss:$16 sps:$4 sm:$0xff]   ;;  %v3614_v58 = vld [vmem:[#allocation7 + $0x148] ss:$16 sps:$4 sm:$0xff]  }
  0x86   :  { %1407 = vmatprep.subr.bf16.mxu0 %v3600_v59  ;;  %v3622_v59 = vld [vmem:[#allocation7 + $0x16c] ss:$16 sps:$4 sm:$0xff]  }
  0x88   :  { %534 = vmatpush1.bf16.msra.mxu1 %v3491_v25  ;;  %v3540_v25 = vld [vmem:[#allocation5 + $0x188] ss:$16 sps:$4 sm:$0xff]  }
  0x89   :  { %535 = vmatprep.subr.bf16.mxu1 %v3492_v26  ;;  %1408 = vmatpush1.bf16.msra.mxu0 %v3605_v62  ;;  %v3545_v26 = vld [vmem:[#allocation5 + $0x1ac] ss:$16 sps:$4 sm:$0xff]   ;;  %v3626_v62 = vld [vmem:[#allocation7 + $0x188] ss:$16 sps:$4 sm:$0xff]  }
  0x8a   :  { %1409 = vmatprep.subr.bf16.mxu0 %v3606_v63  ;;  %v3634_v63 = vld [vmem:[#allocation7 + $0x1ac] ss:$16 sps:$4 sm:$0xff]  }
  0x8c   :  { %536 = vmatpush1.bf16.msra.mxu1 %v3494_v30  ;;  %v3551_v30 = vld [vmem:[#allocation5 + $0x1ec] ss:$16 sps:$4 sm:$0xff]  }
  0x8d   :  { %537 = vmatprep.subr.bf16.mxu1 %v3495_v31  ;;  %1410 = vmatpush1.bf16.msra.mxu0 %v3611_v2  ;;  %v3549_v31 = vld [vmem:[#allocation5 + $0x1e8] ss:$16 sps:$4 sm:$0xff]  }
  0x8e   :  { %1411 = vmatprep.subr.bf16.mxu0 %v3612_v3  ;;  %v3638_v2 = vld [vmem:[#allocation7 + $0x1c8] ss:$16 sps:$4 sm:$0xff]   ;;  %v3646_v3 = vld [vmem:[#allocation7 + $0x1ec] ss:$16 sps:$4 sm:$0xff]  }
  0x90   :  { %538 = vmatpush1.bf16.msra.mxu1 %v3497_v34  ;;  %v3562_v34 = vld [vmem:[#allocation7 + $0x2c] ss:$16 sps:$4 sm:$0xff]  }
  0x91   :  { %539 = vmatprep.subr.bf16.mxu1 %v3498_v35  ;;  %1412 = vmatpush1.bf16.msra.mxu0 %v3617_v6  ;;  %v3560_v35 = vld [vmem:[#allocation7 + $0x28] ss:$16 sps:$4 sm:$0xff]   ;;  %v171_v6 = vlaneseq }
  0x92   :  { %1413 = vmatprep.subr.bf16.mxu0 %v3618_v7 }
  0x93   :  { %v4314_v7 = vshrl.u32 %v171_v6, 7  ;;  %v3725_v6 = vld [vmem:[#allocation7 + $0x38c] ss:$16 sps:$4 sm:$0xff]  }
  0x94   :  { %540 = vmatpush1.bf16.msra.mxu1 %v3500_v38  ;;  %v3574_v38 = vld [vmem:[#allocation7 + $0x6c] ss:$16 sps:$4 sm:$0xff]  }
  0x95   :  { %541 = vmatprep.subr.bf16.mxu1 %v3501_v40  ;;  %1414 = vmatpush1.bf16.msra.mxu0 %v3623_v10  ;;  %v3580_v40 = vld [vmem:[#allocation7 + $0x8c] ss:$16 sps:$4 sm:$0xff]   ;;  %v4325_v10 = vsub.s32 1, %v4314_v7 }
  0x96   :  { %1415 = vmatprep.subr.bf16.mxu0 %v3624_v11 }
  0x98   :  { %542 = vmatpush1.bf16.msra.mxu1 %v3503_v42  ;;  %v3586_v42 = vld [vmem:[#allocation7 + $0xac] ss:$16 sps:$4 sm:$0xff]  }
  0x99   :  { %552 = vmatprep.subr.bf16.mxu1 %v3506_v44  ;;  %v3592_v44 = vld [vmem:[#allocation7 + $0xcc] ss:$16 sps:$4 sm:$0xff]  }
  0x9b   :  { %544 = vmatmul.mubr.bf16.vlgmr.msra.gmra.mrb[0].mxu1 %v4309_v47 }
  0x9c   :  { %553 = vmatpush1.bf16.msra.mxu1 %v3504_v48  ;;  %584 = vmatprep.mubr.bf16.mxu1 %v4306_v14  ;;  %v3629_v14 = vld [vmem:[#allocation7 + $0x180] ss:$16 sps:$4 sm:$0xff]   ;;  %v3598_v48 = vld [vmem:[#allocation7 + $0xec] ss:$16 sps:$4 sm:$0xff]  }
  0x9d   :  { %554 = vmatprep.subr.bf16.mxu1 %v3509_v49  ;;  %1416 = vmatpush1.bf16.msra.mxu0 %v3629_v14  ;;  %v3642_v49 = vld [vmem:[#allocation7 + $0x1e4] ss:$16 sps:$4 sm:$0xff]  }
  0x9e   :  { %1417 = vmatprep.subr.bf16.mxu0 %v3630_v15 }
  0xa0   :  { %555 = vmatpush1.bf16.msra.mxu1 %v3507_v52  ;;  %v3604_v52 = vld [vmem:[#allocation7 + $0x10c] ss:$16 sps:$4 sm:$0xff]  }
  0xa1   :  { %556 = vmatprep.subr.bf16.mxu1 %v3512_v53  ;;  %1418 = vmatpush1.bf16.msra.mxu0 %v3635_v18  ;;  %v3650_v53 = vld [vmem:[#allocation7 + $0x204] ss:$16 sps:$4 sm:$0xff]  }
  0xa2   :  { %1419 = vmatprep.subr.bf16.mxu0 %v3636_v45  ;;  %v3686_v45 = vld [vmem:[#allocation7 + $0x2c4] ss:$16 sps:$4 sm:$0xff]  }
  0xa4   :  { %557 = vmatpush1.bf16.msra.mxu1 %v3510_v56  ;;  %v3608_v56 = vld [vmem:[#allocation7 + $0x128] ss:$16 sps:$4 sm:$0xff]  }
  0xa5   :  { %558 = vmatprep.subr.bf16.mxu1 %v3515_v57  ;;  %v3616_v57 = vld [vmem:[#allocation7 + $0x14c] ss:$16 sps:$4 sm:$0xff]  }
  0xa8   :  { %559 = vmatpush1.bf16.msra.mxu1 %v3513_v60  ;;  %v3620_v60 = vld [vmem:[#allocation7 + $0x168] ss:$16 sps:$4 sm:$0xff]  }
  0xa9   :  { %560 = vmatprep.subr.bf16.mxu1 %v3518_v61  ;;  %v3628_v61 = vld [vmem:[#allocation7 + $0x18c] ss:$16 sps:$4 sm:$0xff]  }
  0xac   :  { %561 = vmatpush1.bf16.msra.mxu1 %v3516_v0  ;;  %v3632_v0 = vld [vmem:[#allocation7 + $0x1a8] ss:$16 sps:$4 sm:$0xff]  }
  0xad   :  { %562 = vmatprep.subr.bf16.mxu1 %v3521_v1  ;;  %v3640_v1 = vld [vmem:[#allocation7 + $0x1cc] ss:$16 sps:$4 sm:$0xff]  }
  0xb0   :  { %563 = vmatpush1.bf16.msra.mxu1 %v3519_v4  ;;  %v3644_v4 = vld [vmem:[#allocation7 + $0x1e8] ss:$16 sps:$4 sm:$0xff]  }
  0xb1   :  { %564 = vmatprep.subr.bf16.mxu1 %v3524_v5  ;;  %v3653_v5 = vld [vmem:[#allocation7 + $0x20c] ss:$16 sps:$4 sm:$0xff]  }
  0xb4   :  { %565 = vmatpush1.bf16.msra.mxu1 %v3522_v8  ;;  %v4317_v8 = vsub.s32 0, %v4314_v7 }
  0xb5   :  { %566 = vmatprep.subr.bf16.mxu1 %v3527_v9  ;;  %v4322_v9 = vld [vmem:[%s4400_s2] sm:$0xf] }
  0xb6   :  { %v174_v11 = vrot.slane %v4322_v9, %v4317_v8 }
  0xb8   :  { %567 = vmatpush1.bf16.msra.mxu1 %v3525_v12  ;;  %v178_v12 = vrot.slane %v4322_v9, %v4325_v10 }
  0xb9   :  { %568 = vmatprep.subr.bf16.mxu1 %v3530_v13 }
  0xbc   :  { %569 = vmatpush1.bf16.msra.mxu1 %v3528_v16 }
  0xbd   :  { %570 = vmatprep.subr.bf16.mxu1 %v3533_v17 }
  0xc0   :  { %571 = vmatpush1.bf16.msra.mxu1 %v3531_v19 }
  0xc1   :  { %572 = vmatprep.subr.bf16.mxu1 %v3536_v20 }
  0xc4   :  { %573 = vmatpush1.bf16.msra.mxu1 %v3534_v21 }
  0xc5   :  { %574 = vmatprep.subr.bf16.mxu1 %v3539_v22 }
  0xc8   :  { %575 = vmatpush1.bf16.msra.mxu1 %v3537_v23  ;;  %v3648_v23 = vld [vmem:[#allocation7 + $0x200] ss:$16 sps:$4 sm:$0xff]  }
  0xc9   :  { %576 = vmatprep.subr.bf16.mxu1 %v3542_v24  ;;  %v3651_v24 = vld [vmem:[#allocation7 + $0x208] ss:$16 sps:$4 sm:$0xff]  }
  0xcc   :  { %577 = vmatpush1.bf16.msra.mxu1 %v3540_v25  ;;  %v3656_v25 = vld [vmem:[#allocation7 + $0x224] ss:$16 sps:$4 sm:$0xff]  }
  0xcd   :  { %578 = vmatprep.subr.bf16.mxu1 %v3545_v26  ;;  %v3659_v26 = vld [vmem:[#allocation7 + $0x22c] ss:$16 sps:$4 sm:$0xff]  }
  0xd0   :  { %579 = vmatpush1.bf16.msra.mxu1 %v3543_v27  ;;  %v3654_v27 = vld [vmem:[#allocation7 + $0x220] ss:$16 sps:$4 sm:$0xff]  }
  0xd1   :  { %580 = vmatprep.subr.bf16.mxu1 %v3548_v28  ;;  %v3657_v28 = vld [vmem:[#allocation7 + $0x228] ss:$16 sps:$4 sm:$0xff]  }
  0xd4   :  { %581 = vmatpush1.bf16.msra.mxu1 %v3546_v29  ;;  %v3662_v29 = vld [vmem:[#allocation7 + $0x244] ss:$16 sps:$4 sm:$0xff]  }
  0xd5   :  { %582 = vmatprep.subr.bf16.mxu1 %v3551_v30  ;;  %v3665_v30 = vld [vmem:[#allocation7 + $0x24c] ss:$16 sps:$4 sm:$0xff]  }
  0xd8   :  { %583 = vmatpush1.bf16.msra.mxu1 %v3549_v31  ;;  %v3660_v31 = vld [vmem:[#allocation7 + $0x240] ss:$16 sps:$4 sm:$0xff]  }
  0xd9   :  { %1473 = vmatprep.subr.bf16.mxu1 %v3556_v32  ;;  %v3663_v32 = vld [vmem:[#allocation7 + $0x248] ss:$16 sps:$4 sm:$0xff]  }
  0xdb   :  { %585 = vmatmul.mubr.bf16.vlgmr.msra.gmra.mrb[4].mxu1 %v4309_v47  ;;  %v3641_v47 = vld [vmem:[#allocation7 + $0x1c0] ss:$16 sps:$4 sm:$0xff]  }
  0xdc   :  { %1474 = vmatpush1.bf16.msra.mxu1 %v3554_v33  ;;  %1420 = vmatpush1.bf16.msra.mxu0 %v3641_v47  ;;  %v3668_v33 = vld [vmem:[#allocation7 + $0x264] ss:$16 sps:$4 sm:$0xff]   ;;  %v3684_v47 = vld [vmem:[#allocation7 + $0x2c0] ss:$16 sps:$4 sm:$0xff]  }
  0xdd   :  { %1475 = vmatprep.subr.bf16.mxu1 %v3562_v34  ;;  %1421 = vmatprep.subr.bf16.mxu0 %v3642_v49  ;;  %v3671_v34 = vld [vmem:[#allocation7 + $0x26c] ss:$16 sps:$4 sm:$0xff]   ;;  %v3692_v49 = vld [vmem:[#allocation7 + $0x2e4] ss:$16 sps:$4 sm:$0xff]  }
  0xe0   :  { %1476 = vmatpush1.bf16.msra.mxu1 %v3560_v35  ;;  %1422 = vmatpush1.bf16.msra.mxu0 %v3647_v51  ;;  %v3666_v35 = vld [vmem:[#allocation7 + $0x260] ss:$16 sps:$4 sm:$0xff]  }
  0xe1   :  { %1477 = vmatprep.subr.bf16.mxu1 %v3568_v36  ;;  %1432 = vmatprep.subr.bf16.mxu0 %v3650_v53  ;;  %v3669_v36 = vld [vmem:[#allocation7 + $0x268] ss:$16 sps:$4 sm:$0xff]   ;;  %v3690_v51 = vld [vmem:[#allocation7 + $0x2e0] ss:$16 sps:$4 sm:$0xff]   ;;  %v3698_v53 = vld [vmem:[#allocation7 + $0x304] ss:$16 sps:$4 sm:$0xff]  }
  0xe4   :  { %1478 = vmatpush1.bf16.msra.mxu1 %v3566_v37  ;;  %v3674_v37 = vld [vmem:[#allocation7 + $0x284] ss:$16 sps:$4 sm:$0xff]  }
  0xe5   :  { %1479 = vmatprep.subr.bf16.mxu1 %v3574_v38  ;;  %v3677_v38 = vld [vmem:[#allocation7 + $0x28c] ss:$16 sps:$4 sm:$0xff]  }
  0xe8   :  { %1480 = vmatpush1.bf16.msra.mxu1 %v3572_v39  ;;  %v3672_v39 = vld [vmem:[#allocation7 + $0x280] ss:$16 sps:$4 sm:$0xff]  }
  0xe9   :  { %1481 = vmatprep.subr.bf16.mxu1 %v3580_v40  ;;  %v3675_v40 = vld [vmem:[#allocation7 + $0x288] ss:$16 sps:$4 sm:$0xff]  }
  0xec   :  { %1482 = vmatpush1.bf16.msra.mxu1 %v3578_v41  ;;  %v3680_v41 = vld [vmem:[#allocation7 + $0x2a4] ss:$16 sps:$4 sm:$0xff]  }
  0xed   :  { %1483 = vmatprep.subr.bf16.mxu1 %v3586_v42  ;;  %v3683_v42 = vld [vmem:[#allocation7 + $0x2ac] ss:$16 sps:$4 sm:$0xff]  }
  0xf0   :  { %1484 = vmatpush1.bf16.msra.mxu1 %v3584_v43  ;;  %v3678_v43 = vld [vmem:[#allocation7 + $0x2a0] ss:$16 sps:$4 sm:$0xff]  }
  0xf1   :  { %1485 = vmatprep.subr.bf16.mxu1 %v3592_v44  ;;  %v3681_v44 = vld [vmem:[#allocation7 + $0x2a8] ss:$16 sps:$4 sm:$0xff]  }
  0xf4   :  { %1486 = vmatpush1.bf16.msra.mxu1 %v3590_v46  ;;  %v3689_v46 = vld [vmem:[#allocation7 + $0x2cc] ss:$16 sps:$4 sm:$0xff]  }
  0xf5   :  { %1487 = vmatprep.subr.bf16.mxu1 %v3598_v48  ;;  %v3687_v48 = vld [vmem:[#allocation7 + $0x2c8] ss:$16 sps:$4 sm:$0xff]  }
  0xf8   :  { %1488 = vmatpush1.bf16.msra.mxu1 %v3596_v50  ;;  %v3695_v50 = vld [vmem:[#allocation7 + $0x2ec] ss:$16 sps:$4 sm:$0xff]  }
  0xf9   :  { %1489 = vmatprep.subr.bf16.mxu1 %v3604_v52  ;;  %v3693_v52 = vld [vmem:[#allocation7 + $0x2e8] ss:$16 sps:$4 sm:$0xff]  }
  0xfc   :  { %1490 = vmatpush1.bf16.msra.mxu1 %v3602_v54  ;;  %v3701_v54 = vld [vmem:[#allocation7 + $0x30c] ss:$16 sps:$4 sm:$0xff]  }
  0xfd   :  { %1491 = vmatprep.subr.bf16.mxu1 %v3610_v55  ;;  %v3696_v55 = vld [vmem:[#allocation7 + $0x300] ss:$16 sps:$4 sm:$0xff]  }
 0x100   :  { %1492 = vmatpush1.bf16.msra.mxu1 %v3608_v56  ;;  %v3699_v56 = vld [vmem:[#allocation7 + $0x308] ss:$16 sps:$4 sm:$0xff]  }
 0x101   :  { %1493 = vmatprep.subr.bf16.mxu1 %v3616_v57  ;;  %v3704_v57 = vld [vmem:[#allocation7 + $0x324] ss:$16 sps:$4 sm:$0xff]  }
 0x104   :  { %1494 = vmatpush1.bf16.msra.mxu1 %v3614_v58  ;;  %v3707_v58 = vld [vmem:[#allocation7 + $0x32c] ss:$16 sps:$4 sm:$0xff]  }
 0x105   :  { %1495 = vmatprep.subr.bf16.mxu1 %v3622_v59  ;;  %v3702_v59 = vld [vmem:[#allocation7 + $0x320] ss:$16 sps:$4 sm:$0xff]  }
 0x108   :  { %1496 = vmatpush1.bf16.msra.mxu1 %v3620_v60  ;;  %v3705_v60 = vld [vmem:[#allocation7 + $0x328] ss:$16 sps:$4 sm:$0xff]  }
 0x109   :  { %1497 = vmatprep.subr.bf16.mxu1 %v3628_v61  ;;  %v3710_v61 = vld [vmem:[#allocation7 + $0x344] ss:$16 sps:$4 sm:$0xff]  }
 0x10c   :  { %1498 = vmatpush1.bf16.msra.mxu1 %v3626_v62  ;;  %v3713_v62 = vld [vmem:[#allocation7 + $0x34c] ss:$16 sps:$4 sm:$0xff]  }
 0x10d   :  { %1499 = vmatprep.subr.bf16.mxu1 %v3634_v63  ;;  %v3708_v63 = vld [vmem:[#allocation7 + $0x340] ss:$16 sps:$4 sm:$0xff]  }
 0x110   :  { %1500 = vmatpush1.bf16.msra.mxu1 %v3632_v0  ;;  %v3711_v0 = vld [vmem:[#allocation7 + $0x348] ss:$16 sps:$4 sm:$0xff]  }
 0x111   :  { %1501 = vmatprep.subr.bf16.mxu1 %v3640_v1  ;;  %v3716_v1 = vld [vmem:[#allocation7 + $0x364] ss:$16 sps:$4 sm:$0xff]  }
 0x114   :  { %1502 = vmatpush1.bf16.msra.mxu1 %v3638_v2  ;;  %v3719_v2 = vld [vmem:[#allocation7 + $0x36c] ss:$16 sps:$4 sm:$0xff]  }
 0x115   :  { %1503 = vmatprep.subr.bf16.mxu1 %v3646_v3  ;;  %v3714_v3 = vld [vmem:[#allocation7 + $0x360] ss:$16 sps:$4 sm:$0xff]  }
 0x118   :  { %1504 = vmatpush1.bf16.msra.mxu1 %v3644_v4  ;;  %v3717_v4 = vld [vmem:[#allocation7 + $0x368] ss:$16 sps:$4 sm:$0xff]  }
 0x119   :  { %1514 = vmatprep.subr.bf16.mxu1 %v3653_v5  ;;  %v3722_v5 = vld [vmem:[#allocation7 + $0x384] ss:$16 sps:$4 sm:$0xff]  }
 0x16e   :  { %v545_v13 = vpop.f32.mrb[0].mxu1 }
 0x16f   :  { %v546_v14 = vadd.f32 %v545_v13, %v174_v11  ;;  %v547_v15 = vpop.f32.mrb[1].mxu1  ;;  %v3720_v11 = vld [vmem:[#allocation7 + $0x380] ss:$16 sps:$4 sm:$0xff]   ;;  %v3728_v13 = vld [vmem:[#allocation7 + $0x3a4] ss:$16 sps:$4 sm:$0xff]  }
 0x170   :  { %v548_v16 = vadd.f32 %v547_v15, %v178_v12  ;;  %v549_v17 = vpop.f32.mrb[2].mxu1  ;;  %v3723_v12 = vld [vmem:[#allocation7 + $0x388] ss:$16 sps:$4 sm:$0xff]   ;;  %v4332_v15 = vsub.s32 2, %v4314_v7 }
 0x171   :  { %v593_v18 = vmax.f32 %v546_v14, 0.0  ;;  %v550_v19 = vpop.f32.mrb[3].mxu1  ;;  %v3731_v14 = vld [vmem:[#allocation7 + $0x3ac] ss:$16 sps:$4 sm:$0xff]   ;;  %v3729_v17 = vld [vmem:[#allocation7 + $0x3a8] ss:$16 sps:$4 sm:$0xff]  }
 0x172   :  { %v594_v20 = vmax.f32 %v548_v16, 0.0  ;;  %v3726_v16 = vld [vmem:[#allocation7 + $0x3a0] ss:$16 sps:$4 sm:$0xff]   ;;  %v3734_v19 = vld [vmem:[#allocation7 + $0x3c4] ss:$16 sps:$4 sm:$0xff]  }
 0x173   :  { %v597_v21 = vpack.c.bf16 %v593_v18, %v593_v18  ;;  %v4335_v18 = vsub.s32 3, %v4314_v7 }
 0x174   :  { %v598_v22 = vpack.c.bf16 %v594_v20, %v594_v20  ;;  %v3737_v20 = vld [vmem:[#allocation7 + $0x3cc] ss:$16 sps:$4 sm:$0xff]  }
 0x176   :  { %1423 = vmatprep.mubr.bf16.mxu0 %v598_v22  ;;  %1505 = vmatprep.mubr.bf16.mxu1 %v598_v22  ;;  %v186_v22 = vrot.slane %v4322_v9, %v4335_v18 }
 0x177   :  { %1424 = vmatmul.mubr.bf16.vlgmr.msra.gmra.mrb[0].mxu0 %v597_v21  ;;  %1506 = vmatmul.mubr.bf16.vlgmr.msra.gmra.mrb[8].mxu1 %v597_v21  ;;  %v182_v21 = vrot.slane %v4322_v9, %v4332_v15  ;;  %v3746_v9 = vld [vmem:[#allocation8 + $0x4] ss:$16 sps:$4 sm:$0xff]  }
 0x178   :  { %1433 = vmatpush1.bf16.msra.mxu0 %v3648_v23  ;;  %1515 = vmatpush1.bf16.msra.mxu1 %v3651_v24  ;;  %v3732_v23 = vld [vmem:[#allocation7 + $0x3c0] ss:$16 sps:$4 sm:$0xff]   ;;  %v3735_v24 = vld [vmem:[#allocation7 + $0x3c8] ss:$16 sps:$4 sm:$0xff]  }
 0x179   :  { %1434 = vmatprep.subr.bf16.mxu0 %v3656_v25  ;;  %1516 = vmatprep.subr.bf16.mxu1 %v3659_v26  ;;  %v3740_v25 = vld [vmem:[#allocation7 + $0x3e4] ss:$16 sps:$4 sm:$0xff]   ;;  %v3743_v26 = vld [vmem:[#allocation7 + $0x3ec] ss:$16 sps:$4 sm:$0xff]  }
 0x17c   :  { %1435 = vmatpush1.bf16.msra.mxu0 %v3654_v27  ;;  %1517 = vmatpush1.bf16.msra.mxu1 %v3657_v28 }
 0x17d   :  { %1436 = vmatprep.subr.bf16.mxu0 %v3662_v29  ;;  %1518 = vmatprep.subr.bf16.mxu1 %v3665_v30 }
 0x180   :  { %1437 = vmatpush1.bf16.msra.mxu0 %v3660_v31  ;;  %1519 = vmatpush1.bf16.msra.mxu1 %v3663_v32  ;;  %v3738_v31 = vld [vmem:[#allocation7 + $0x3e0] ss:$16 sps:$4 sm:$0xff]   ;;  %v3741_v32 = vld [vmem:[#allocation7 + $0x3e8] ss:$16 sps:$4 sm:$0xff]  }
 0x181   :  { %1438 = vmatprep.subr.bf16.mxu0 %v3668_v33  ;;  %1520 = vmatprep.subr.bf16.mxu1 %v3671_v34 }
 0x184   :  { %1439 = vmatpush1.bf16.msra.mxu0 %v3666_v35  ;;  %1521 = vmatpush1.bf16.msra.mxu1 %v3669_v36  ;;  %v3749_v35 = vld [vmem:[#allocation8 + $0xc] ss:$16 sps:$4 sm:$0xff]  }
 0x185   :  { %1440 = vmatprep.subr.bf16.mxu0 %v3674_v37  ;;  %1522 = vmatprep.subr.bf16.mxu1 %v3677_v38  ;;  %v3744_v38 = vld [vmem:[#allocation8] ss:$16 sps:$4 sm:$0xff]  }
 0x188   :  { %1441 = vmatpush1.bf16.msra.mxu0 %v3672_v39  ;;  %1523 = vmatpush1.bf16.msra.mxu1 %v3675_v40  ;;  %v3747_v39 = vld [vmem:[#allocation8 + $0x8] ss:$16 sps:$4 sm:$0xff]  }
 0x189   :  { %1442 = vmatprep.subr.bf16.mxu0 %v3680_v41  ;;  %1524 = vmatprep.subr.bf16.mxu1 %v3683_v42  ;;  %v3752_v41 = vld [vmem:[#allocation8 + $0x24] ss:$16 sps:$4 sm:$0xff]   ;;  %v3755_v42 = vld [vmem:[#allocation8 + $0x2c] ss:$16 sps:$4 sm:$0xff]  }
 0x18c   :  { %1443 = vmatpush1.bf16.msra.mxu0 %v3678_v43  ;;  %1525 = vmatpush1.bf16.msra.mxu1 %v3681_v44  ;;  %v3750_v43 = vld [vmem:[#allocation8 + $0x20] ss:$16 sps:$4 sm:$0xff]   ;;  %v3753_v44 = vld [vmem:[#allocation8 + $0x28] ss:$16 sps:$4 sm:$0xff]  }
 0x18d   :  { %1444 = vmatprep.subr.bf16.mxu0 %v3686_v45  ;;  %1526 = vmatprep.subr.bf16.mxu1 %v3689_v46  ;;  %v3758_v45 = vld [vmem:[#allocation8 + $0x44] ss:$16 sps:$4 sm:$0xff]   ;;  %v3761_v46 = vld [vmem:[#allocation8 + $0x4c] ss:$16 sps:$4 sm:$0xff]  }
 0x190   :  { %1445 = vmatpush1.bf16.msra.mxu0 %v3684_v47  ;;  %1527 = vmatpush1.bf16.msra.mxu1 %v3687_v48  ;;  %v3756_v47 = vld [vmem:[#allocation8 + $0x40] ss:$16 sps:$4 sm:$0xff]   ;;  %v3759_v48 = vld [vmem:[#allocation8 + $0x48] ss:$16 sps:$4 sm:$0xff]  }
 0x191   :  { %1446 = vmatprep.subr.bf16.mxu0 %v3692_v49  ;;  %1528 = vmatprep.subr.bf16.mxu1 %v3695_v50  ;;  %v3764_v49 = vld [vmem:[#allocation8 + $0x64] ss:$16 sps:$4 sm:$0xff]   ;;  %v3767_v50 = vld [vmem:[#allocation8 + $0x6c] ss:$16 sps:$4 sm:$0xff]  }
 0x194   :  { %1447 = vmatpush1.bf16.msra.mxu0 %v3690_v51  ;;  %1529 = vmatpush1.bf16.msra.mxu1 %v3693_v52  ;;  %v3762_v51 = vld [vmem:[#allocation8 + $0x60] ss:$16 sps:$4 sm:$0xff]   ;;  %v3765_v52 = vld [vmem:[#allocation8 + $0x68] ss:$16 sps:$4 sm:$0xff]  }
 0x195   :  { %1448 = vmatprep.subr.bf16.mxu0 %v3698_v53  ;;  %1530 = vmatprep.subr.bf16.mxu1 %v3701_v54  ;;  %v3770_v53 = vld [vmem:[#allocation8 + $0x84] ss:$16 sps:$4 sm:$0xff]   ;;  %v3773_v54 = vld [vmem:[#allocation8 + $0x8c] ss:$16 sps:$4 sm:$0xff]  }
 0x198   :  { %1449 = vmatpush1.bf16.msra.mxu0 %v3696_v55  ;;  %1531 = vmatpush1.bf16.msra.mxu1 %v3699_v56  ;;  %v3768_v55 = vld [vmem:[#allocation8 + $0x80] ss:$16 sps:$4 sm:$0xff]   ;;  %v3771_v56 = vld [vmem:[#allocation8 + $0x88] ss:$16 sps:$4 sm:$0xff]  }
 0x199   :  { %1450 = vmatprep.subr.bf16.mxu0 %v3704_v57  ;;  %1532 = vmatprep.subr.bf16.mxu1 %v3707_v58  ;;  %v3776_v57 = vld [vmem:[#allocation8 + $0xa4] ss:$16 sps:$4 sm:$0xff]   ;;  %v3779_v58 = vld [vmem:[#allocation8 + $0xac] ss:$16 sps:$4 sm:$0xff]  }
 0x19c   :  { %1451 = vmatpush1.bf16.msra.mxu0 %v3702_v59  ;;  %1533 = vmatpush1.bf16.msra.mxu1 %v3705_v60  ;;  %v3774_v59 = vld [vmem:[#allocation8 + $0xa0] ss:$16 sps:$4 sm:$0xff]   ;;  %v3777_v60 = vld [vmem:[#allocation8 + $0xa8] ss:$16 sps:$4 sm:$0xff]  }
 0x19d   :  { %1452 = vmatprep.subr.bf16.mxu0 %v3710_v61  ;;  %1534 = vmatprep.subr.bf16.mxu1 %v3713_v62  ;;  %v3782_v61 = vld [vmem:[#allocation8 + $0xc4] ss:$16 sps:$4 sm:$0xff]   ;;  %v3785_v62 = vld [vmem:[#allocation8 + $0xcc] ss:$16 sps:$4 sm:$0xff]  }
 0x1a0   :  { %1453 = vmatpush1.bf16.msra.mxu0 %v3708_v63  ;;  %1535 = vmatpush1.bf16.msra.mxu1 %v3711_v0  ;;  %v3780_v63 = vld [vmem:[#allocation8 + $0xc0] ss:$16 sps:$4 sm:$0xff]   ;;  %v3783_v0 = vld [vmem:[#allocation8 + $0xc8] ss:$16 sps:$4 sm:$0xff]  }
 0x1a1   :  { %1454 = vmatprep.subr.bf16.mxu0 %v3716_v1  ;;  %1536 = vmatprep.subr.bf16.mxu1 %v3719_v2  ;;  %v3788_v1 = vld [vmem:[#allocation8 + $0xe4] ss:$16 sps:$4 sm:$0xff]   ;;  %v3791_v2 = vld [vmem:[#allocation8 + $0xec] ss:$16 sps:$4 sm:$0xff]  }
 0x1a4   :  { %1455 = vmatpush1.bf16.msra.mxu0 %v3714_v3  ;;  %1537 = vmatpush1.bf16.msra.mxu1 %v3717_v4  ;;  %v3786_v3 = vld [vmem:[#allocation8 + $0xe0] ss:$16 sps:$4 sm:$0xff]   ;;  %v3789_v4 = vld [vmem:[#allocation8 + $0xe8] ss:$16 sps:$4 sm:$0xff]  }
 0x1a5   :  { %1456 = vmatprep.subr.bf16.mxu0 %v3722_v5  ;;  %1538 = vmatprep.subr.bf16.mxu1 %v3725_v6  ;;  %v3794_v5 = vld [vmem:[#allocation8 + $0x104] ss:$16 sps:$4 sm:$0xff]   ;;  %v3797_v6 = vld [vmem:[#allocation8 + $0x10c] ss:$16 sps:$4 sm:$0xff]  }
 0x1a8   :  { %1457 = vmatpush1.bf16.msra.mxu0 %v3720_v11  ;;  %1539 = vmatpush1.bf16.msra.mxu1 %v3723_v12  ;;  %v3792_v11 = vld [vmem:[#allocation8 + $0x100] ss:$16 sps:$4 sm:$0xff]   ;;  %v3795_v12 = vld [vmem:[#allocation8 + $0x108] ss:$16 sps:$4 sm:$0xff]  }
 0x1a9   :  { %1458 = vmatprep.subr.bf16.mxu0 %v3728_v13  ;;  %1540 = vmatprep.subr.bf16.mxu1 %v3731_v14  ;;  %v3800_v13 = vld [vmem:[#allocation8 + $0x124] ss:$16 sps:$4 sm:$0xff]   ;;  %v3803_v14 = vld [vmem:[#allocation8 + $0x12c] ss:$16 sps:$4 sm:$0xff]  }
 0x1ac   :  { %1459 = vmatpush1.bf16.msra.mxu0 %v3726_v16  ;;  %1541 = vmatpush1.bf16.msra.mxu1 %v3729_v17  ;;  %v3798_v16 = vld [vmem:[#allocation8 + $0x120] ss:$16 sps:$4 sm:$0xff]   ;;  %v3801_v17 = vld [vmem:[#allocation8 + $0x128] ss:$16 sps:$4 sm:$0xff]  }
 0x1ad   :  { %1460 = vmatprep.subr.bf16.mxu0 %v3734_v19  ;;  %1542 = vmatprep.subr.bf16.mxu1 %v3737_v20  ;;  %v3806_v19 = vld [vmem:[#allocation8 + $0x144] ss:$16 sps:$4 sm:$0xff]   ;;  %v3809_v20 = vld [vmem:[#allocation8 + $0x14c] ss:$16 sps:$4 sm:$0xff]  }
 0x1ae   :  { %v586_v7 = vpop.f32.mrb[4].mxu1 }
 0x1af   :  { %v587_v27 = vadd.f32 %v586_v7, %v182_v21  ;;  %v588_v28 = vpop.f32.mrb[5].mxu1  ;;  %v3804_v21 = vld [vmem:[#allocation8 + $0x140] ss:$16 sps:$4 sm:$0xff]   ;;  %v3818_v7 = vld [vmem:[#allocation8 + $0x184] ss:$16 sps:$4 sm:$0xff]  }
 0x1b0   :  { %v589_v29 = vadd.f32 %v588_v28, %v186_v22  ;;  %v590_v30 = vpop.f32.mrb[6].mxu1  ;;  %1461 = vmatpush1.bf16.msra.mxu0 %v3732_v23  ;;  %1543 = vmatpush1.bf16.msra.mxu1 %v3735_v24  ;;  %v3807_v22 = vld [vmem:[#allocation8 + $0x148] ss:$16 sps:$4 sm:$0xff]   ;;  %v3812_v23 = vld [vmem:[#allocation8 + $0x164] ss:$16 sps:$4 sm:$0xff]  }
 0x1b1   :  { %v595_v33 = vmax.f32 %v587_v27, 0.0  ;;  %v591_v34 = vpop.f32.mrb[7].mxu1  ;;  %1462 = vmatprep.subr.bf16.mxu0 %v3740_v25  ;;  %1544 = vmatprep.subr.bf16.mxu1 %v3743_v26  ;;  %v3815_v24 = vld [vmem:[#allocation8 + $0x16c] ss:$16 sps:$4 sm:$0xff]   ;;  %v3810_v25 = vld [vmem:[#allocation8 + $0x160] ss:$16 sps:$4 sm:$0xff]  }
 0x1b2   :  { %v596_v36 = vmax.f32 %v589_v29, 0.0  ;;  %v3813_v26 = vld [vmem:[#allocation8 + $0x168] ss:$16 sps:$4 sm:$0xff]   ;;  %v3821_v27 = vld [vmem:[#allocation8 + $0x18c] ss:$16 sps:$4 sm:$0xff]  }
 0x1b3   :  { %v599_v40 = vpack.c.bf16 %v595_v33, %v595_v33  ;;  %v3816_v28 = vld [vmem:[#allocation8 + $0x180] ss:$16 sps:$4 sm:$0xff]   ;;  %v3819_v29 = vld [vmem:[#allocation8 + $0x188] ss:$16 sps:$4 sm:$0xff]   ;;  %v3824_v30 = vld [vmem:[#allocation8 + $0x1a4] ss:$16 sps:$4 sm:$0xff]  }
 0x1b4   :  { %v600_v37 = vpack.c.bf16 %v596_v36, %v596_v36  ;;  %1463 = vmatpush1.bf16.msra.mxu0 %v3738_v31  ;;  %1545 = vmatpush1.bf16.msra.mxu1 %v3741_v32  ;;  %v3827_v31 = vld [vmem:[#allocation8 + $0x1ac] ss:$16 sps:$4 sm:$0xff]   ;;  %v3822_v32 = vld [vmem:[#allocation8 + $0x1a0] ss:$16 sps:$4 sm:$0xff]   ;;  %v3825_v33 = vld [vmem:[#allocation8 + $0x1a8] ss:$16 sps:$4 sm:$0xff]  }
 0x1b5   :  { %2353 = vmatprep.subr.bf16.mxu0 %v3746_v9  ;;  %2435 = vmatprep.subr.bf16.mxu1 %v3749_v35  ;;  %v3830_v34 = vld [vmem:[#allocation8 + $0x1c4] ss:$16 sps:$4 sm:$0xff]   ;;  %v3833_v9 = vld [vmem:[#allocation8 + $0x1cc] ss:$16 sps:$4 sm:$0xff]   ;;  %v3828_v35 = vld [vmem:[#allocation8 + $0x1c0] ss:$16 sps:$4 sm:$0xff]  }
 0x1b6   :  { %1464 = vmatprep.mubr.bf16.mxu0 %v600_v37  ;;  %1546 = vmatprep.mubr.bf16.mxu1 %v600_v37  ;;  %v3831_v36 = vld [vmem:[#allocation8 + $0x1c8] ss:$16 sps:$4 sm:$0xff]   ;;  %v3836_v37 = vld [vmem:[#allocation8 + $0x1e4] ss:$16 sps:$4 sm:$0xff]  }
 0x1b7   :  { %1465 = vmatmul.mubr.bf16.vlgmr.msra.gmra.mrb[0].mxu0 %v599_v40  ;;  %1547 = vmatmul.mubr.bf16.vlgmr.msra.gmra.mrb[8].mxu1 %v599_v40  ;;  %v3837_v40 = vld [vmem:[#allocation8 + $0x1e8] ss:$16 sps:$4 sm:$0xff]  }
 0x1b8   :  { %2354 = vmatpush1.bf16.msra.mxu0 %v3744_v38  ;;  %2436 = vmatpush1.bf16.msra.mxu1 %v3747_v39  ;;  %v3839_v38 = vld [vmem:[#allocation8 + $0x1ec] ss:$16 sps:$4 sm:$0xff]   ;;  %v3834_v39 = vld [vmem:[#allocation8 + $0x1e0] ss:$16 sps:$4 sm:$0xff]  }
 0x1b9   :  { %2355 = vmatprep.subr.bf16.mxu0 %v3752_v41  ;;  %2437 = vmatprep.subr.bf16.mxu1 %v3755_v42  ;;  %v3842_v41 = vld [vmem:[#allocation8 + $0x204] ss:$16 sps:$4 sm:$0xff]   ;;  %v3845_v42 = vld [vmem:[#allocation8 + $0x20c] ss:$16 sps:$4 sm:$0xff]  }
 0x1bc   :  { %2356 = vmatpush1.bf16.msra.mxu0 %v3750_v43  ;;  %2438 = vmatpush1.bf16.msra.mxu1 %v3753_v44  ;;  %v729_v43 = vld [vmem:[%s4402_s4] sm:$0xf] }
 0x1bd   :  { %2357 = vmatprep.subr.bf16.mxu0 %v3758_v45  ;;  %2439 = vmatprep.subr.bf16.mxu1 %v3761_v46  ;;  %v734_v44 = vrot.slane %v729_v43, %v4317_v8  ;;  %v742_v45 = vrot.slane %v729_v43, %v4332_v15  ;;  %v738_v46 = vrot.slane %v729_v43, %v4325_v10 }
 0x1c0   :  { %2358 = vmatpush1.bf16.msra.mxu0 %v3756_v47  ;;  %2440 = vmatpush1.bf16.msra.mxu1 %v3759_v48  ;;  %v746_v47 = vrot.slane %v729_v43, %v4335_v18  ;;  %v3894_v43 = vld [vmem:[#allocation8 + $0x320] ss:$16 sps:$4 sm:$0xff]  }
 0x1c1   :  { %2359 = vmatprep.subr.bf16.mxu0 %v3764_v49  ;;  %2441 = vmatprep.subr.bf16.mxu1 %v3767_v50 }
 0x1c4   :  { %2360 = vmatpush1.bf16.msra.mxu0 %v3762_v51  ;;  %2442 = vmatpush1.bf16.msra.mxu1 %v3765_v52 }
 0x1c5   :  { %2361 = vmatprep.subr.bf16.mxu0 %v3770_v53  ;;  %2443 = vmatprep.subr.bf16.mxu1 %v3773_v54 }
 0x1c8   :  { %2362 = vmatpush1.bf16.msra.mxu0 %v3768_v55  ;;  %2444 = vmatpush1.bf16.msra.mxu1 %v3771_v56 }
 0x1c9   :  { %2363 = vmatprep.subr.bf16.mxu0 %v3776_v57  ;;  %2445 = vmatprep.subr.bf16.mxu1 %v3779_v58 }
 0x1cc   :  { %2364 = vmatpush1.bf16.msra.mxu0 %v3774_v59  ;;  %2446 = vmatpush1.bf16.msra.mxu1 %v3777_v60 }
 0x1cd   :  { %2365 = vmatprep.subr.bf16.mxu0 %v3782_v61  ;;  %2447 = vmatprep.subr.bf16.mxu1 %v3785_v62 }
 0x1d0   :  { %2366 = vmatpush1.bf16.msra.mxu0 %v3780_v63  ;;  %2448 = vmatpush1.bf16.msra.mxu1 %v3783_v0 }
 0x1d1   :  { %2367 = vmatprep.subr.bf16.mxu0 %v3788_v1  ;;  %2449 = vmatprep.subr.bf16.mxu1 %v3791_v2  ;;  %v3840_v1 = vld [vmem:[#allocation8 + $0x200] ss:$16 sps:$4 sm:$0xff]   ;;  %v3843_v2 = vld [vmem:[#allocation8 + $0x208] ss:$16 sps:$4 sm:$0xff]  }
 0x1d4   :  { %2368 = vmatpush1.bf16.msra.mxu0 %v3786_v3  ;;  %2450 = vmatpush1.bf16.msra.mxu1 %v3789_v4  ;;  %v3848_v4 = vld [vmem:[#allocation8 + $0x224] ss:$16 sps:$4 sm:$0xff]  }
 0x1d5   :  { %2369 = vmatprep.subr.bf16.mxu0 %v3794_v5  ;;  %2451 = vmatprep.subr.bf16.mxu1 %v3797_v6  ;;  %v3851_v5 = vld [vmem:[#allocation8 + $0x22c] ss:$16 sps:$4 sm:$0xff]  }
 0x1d8   :  { %2370 = vmatpush1.bf16.msra.mxu0 %v3792_v11  ;;  %2452 = vmatpush1.bf16.msra.mxu1 %v3795_v12  ;;  %v3846_v11 = vld [vmem:[#allocation8 + $0x220] ss:$16 sps:$4 sm:$0xff]   ;;  %v3849_v12 = vld [vmem:[#allocation8 + $0x228] ss:$16 sps:$4 sm:$0xff]  }
 0x1d9   :  { %2371 = vmatprep.subr.bf16.mxu0 %v3800_v13  ;;  %2453 = vmatprep.subr.bf16.mxu1 %v3803_v14  ;;  %v3854_v13 = vld [vmem:[#allocation8 + $0x244] ss:$16 sps:$4 sm:$0xff]   ;;  %v3857_v14 = vld [vmem:[#allocation8 + $0x24c] ss:$16 sps:$4 sm:$0xff]  }
 0x1dc   :  { %2372 = vmatpush1.bf16.msra.mxu0 %v3798_v16  ;;  %2454 = vmatpush1.bf16.msra.mxu1 %v3801_v17  ;;  %v3852_v16 = vld [vmem:[#allocation8 + $0x240] ss:$16 sps:$4 sm:$0xff]   ;;  %v3855_v17 = vld [vmem:[#allocation8 + $0x248] ss:$16 sps:$4 sm:$0xff]  }
 0x1dd   :  { %2373 = vmatprep.subr.bf16.mxu0 %v3806_v19  ;;  %2455 = vmatprep.subr.bf16.mxu1 %v3809_v20  ;;  %v3860_v19 = vld [vmem:[#allocation8 + $0x264] ss:$16 sps:$4 sm:$0xff]   ;;  %v3863_v20 = vld [vmem:[#allocation8 + $0x26c] ss:$16 sps:$4 sm:$0xff]  }
 0x1e0   :  { %2374 = vmatpush1.bf16.msra.mxu0 %v3804_v21  ;;  %2456 = vmatpush1.bf16.msra.mxu1 %v3807_v22  ;;  %v3858_v21 = vld [vmem:[#allocation8 + $0x260] ss:$16 sps:$4 sm:$0xff]   ;;  %v3861_v22 = vld [vmem:[#allocation8 + $0x268] ss:$16 sps:$4 sm:$0xff]  }
 0x1e1   :  { %2375 = vmatprep.subr.bf16.mxu0 %v3812_v23  ;;  %2457 = vmatprep.subr.bf16.mxu1 %v3815_v24  ;;  %v3866_v23 = vld [vmem:[#allocation8 + $0x284] ss:$16 sps:$4 sm:$0xff]   ;;  %v3869_v24 = vld [vmem:[#allocation8 + $0x28c] ss:$16 sps:$4 sm:$0xff]  }
 0x1e4   :  { %2376 = vmatpush1.bf16.msra.mxu0 %v3810_v25  ;;  %2458 = vmatpush1.bf16.msra.mxu1 %v3813_v26  ;;  %v3864_v25 = vld [vmem:[#allocation8 + $0x280] ss:$16 sps:$4 sm:$0xff]   ;;  %v3867_v26 = vld [vmem:[#allocation8 + $0x288] ss:$16 sps:$4 sm:$0xff]  }
 0x1e5   :  { %2377 = vmatprep.subr.bf16.mxu0 %v3818_v7  ;;  %2459 = vmatprep.subr.bf16.mxu1 %v3821_v27  ;;  %v3872_v7 = vld [vmem:[#allocation8 + $0x2a4] ss:$16 sps:$4 sm:$0xff]   ;;  %v3875_v27 = vld [vmem:[#allocation8 + $0x2ac] ss:$16 sps:$4 sm:$0xff]  }
 0x1e8   :  { %2378 = vmatpush1.bf16.msra.mxu0 %v3816_v28  ;;  %2460 = vmatpush1.bf16.msra.mxu1 %v3819_v29  ;;  %v3870_v28 = vld [vmem:[#allocation8 + $0x2a0] ss:$16 sps:$4 sm:$0xff]   ;;  %v3873_v29 = vld [vmem:[#allocation8 + $0x2a8] ss:$16 sps:$4 sm:$0xff]  }
 0x1e9   :  { %2379 = vmatprep.subr.bf16.mxu0 %v3824_v30  ;;  %2461 = vmatprep.subr.bf16.mxu1 %v3827_v31  ;;  %v3878_v30 = vld [vmem:[#allocation8 + $0x2c4] ss:$16 sps:$4 sm:$0xff]   ;;  %v3881_v31 = vld [vmem:[#allocation8 + $0x2cc] ss:$16 sps:$4 sm:$0xff]  }
 0x1ec   :  { %2380 = vmatpush1.bf16.msra.mxu0 %v3822_v32  ;;  %2462 = vmatpush1.bf16.msra.mxu1 %v3825_v33  ;;  %v3876_v32 = vld [vmem:[#allocation8 + $0x2c0] ss:$16 sps:$4 sm:$0xff]   ;;  %v3879_v33 = vld [vmem:[#allocation8 + $0x2c8] ss:$16 sps:$4 sm:$0xff]  }
 0x1ed   :  { %2381 = vmatprep.subr.bf16.mxu0 %v3830_v34  ;;  %2463 = vmatprep.subr.bf16.mxu1 %v3833_v9  ;;  %v3884_v34 = vld [vmem:[#allocation8 + $0x2e4] ss:$16 sps:$4 sm:$0xff]   ;;  %v3887_v9 = vld [vmem:[#allocation8 + $0x2ec] ss:$16 sps:$4 sm:$0xff]  }
 0x1f0   :  { %2382 = vmatpush1.bf16.msra.mxu0 %v3828_v35  ;;  %2464 = vmatpush1.bf16.msra.mxu1 %v3831_v36  ;;  %v3882_v35 = vld [vmem:[#allocation8 + $0x2e0] ss:$16 sps:$4 sm:$0xff]   ;;  %v3885_v36 = vld [vmem:[#allocation8 + $0x2e8] ss:$16 sps:$4 sm:$0xff]  }
 0x1f1   :  { %2383 = vmatprep.subr.bf16.mxu0 %v3836_v37  ;;  %2465 = vmatprep.subr.bf16.mxu1 %v3839_v38  ;;  %v3890_v37 = vld [vmem:[#allocation8 + $0x304] ss:$16 sps:$4 sm:$0xff]   ;;  %v3893_v38 = vld [vmem:[#allocation8 + $0x30c] ss:$16 sps:$4 sm:$0xff]  }
 0x1f4   :  { %2384 = vmatpush1.bf16.msra.mxu0 %v3834_v39  ;;  %2466 = vmatpush1.bf16.msra.mxu1 %v3837_v40  ;;  %v3888_v39 = vld [vmem:[#allocation8 + $0x300] ss:$16 sps:$4 sm:$0xff]   ;;  %v3891_v40 = vld [vmem:[#allocation8 + $0x308] ss:$16 sps:$4 sm:$0xff]  }
 0x1f5   :  { %2394 = vmatprep.subr.bf16.mxu0 %v3842_v41  ;;  %2476 = vmatprep.subr.bf16.mxu1 %v3845_v42  ;;  %v3896_v41 = vld [vmem:[#allocation8 + $0x324] ss:$16 sps:$4 sm:$0xff]   ;;  %v3899_v42 = vld [vmem:[#allocation8 + $0x32c] ss:$16 sps:$4 sm:$0xff]  }
 0x28a   :  { %v1466_v48 = vpop.f32.mrb[0].mxu0  ;;  %v1548_v49 = vpop.f32.mrb[8].mxu1 }
 0x28b   :  { %v3416_v50 = vadd.f32 %v1466_v48, %v734_v44  ;;  %v3418_v51 = vadd.f32 %v1548_v49, %v742_v45  ;;  %v1468_v52 = vpop.f32.mrb[1].mxu0  ;;  %v1550_v53 = vpop.f32.mrb[9].mxu1  ;;  %v3897_v44 = vld [vmem:[#allocation8 + $0x328] ss:$16 sps:$4 sm:$0xff]   ;;  %v3902_v45 = vld [vmem:[#allocation8 + $0x344] ss:$16 sps:$4 sm:$0xff]  }
 0x28c   :  { %v3417_v54 = vadd.f32 %v1468_v52, %v738_v46  ;;  %v3419_v55 = vadd.f32 %v1550_v53, %v746_v47  ;;  %v1470_v56 = vpop.f32.mrb[2].mxu0  ;;  %v1552_v57 = vpop.f32.mrb[10].mxu1  ;;  %v3905_v46 = vld [vmem:[#allocation8 + $0x34c] ss:$16 sps:$4 sm:$0xff]   ;;  %v3900_v47 = vld [vmem:[#allocation8 + $0x340] ss:$16 sps:$4 sm:$0xff]  }
 0x28d   :  { %v1555_v58 = vmax.f32 %v3416_v50, 0.0  ;;  %v4348_v59 = vmax.f32 %v3418_v51, 0.0  ;;  %v1471_v60 = vpop.f32.mrb[3].mxu0  ;;  %v1553_v61 = vpop.f32.mrb[11].mxu1  ;;  %v3903_v48 = vld [vmem:[#allocation8 + $0x348] ss:$16 sps:$4 sm:$0xff]  }
 0x28e   :  { %v1556_v62 = vmax.f32 %v3417_v54, 0.0  ;;  %v1558_v63 = vmax.f32 %v3419_v55, 0.0  ;;  %v3908_v49 = vld [vmem:[#allocation8 + $0x364] ss:$16 sps:$4 sm:$0xff]   ;;  %v3911_v50 = vld [vmem:[#allocation8 + $0x36c] ss:$16 sps:$4 sm:$0xff]  }
 0x28f   :  { %3007 = vst [vmem:[%s4408_s10] sm:$0xff] %v1555_v58  ;;  %3009 = vst [vmem:[%s4408_s10 + $0x10] sm:$0xff] %v4348_v59  ;;  %v1559_v3 = vpack.c.bf16 %v1555_v58, %v1555_v58  ;;  %v3906_v51 = vld [vmem:[#allocation8 + $0x360] ss:$16 sps:$4 sm:$0xff]   ;;  %v3909_v52 = vld [vmem:[#allocation8 + $0x368] ss:$16 sps:$4 sm:$0xff]  }
 0x290   :  { %v1560_v0 = vpack.c.bf16 %v1556_v62, %v1556_v62  ;;  %3008 = vst [vmem:[%s4408_s10 + $0x8] sm:$0xff] %v1556_v62  ;;  %3010 = vst [vmem:[%s4408_s10 + $0x18] sm:$0xff] %v1558_v63  ;;  %v1562_v6 = vpack.c.bf16 %v1558_v63, %v1558_v63  ;;  %v3914_v53 = vld [vmem:[#allocation8 + $0x384] ss:$16 sps:$4 sm:$0xff]   ;;  %v3917_v54 = vld [vmem:[#allocation8 + $0x38c] ss:$16 sps:$4 sm:$0xff]  }
 0x291   :  { %v3912_v55 = vld [vmem:[#allocation8 + $0x380] ss:$16 sps:$4 sm:$0xff]   ;;  %v3915_v56 = vld [vmem:[#allocation8 + $0x388] ss:$16 sps:$4 sm:$0xff]   ;;  %v3920_v57 = vld [vmem:[#allocation8 + $0x3a4] ss:$16 sps:$4 sm:$0xff]  }
 0x292   :  { %2385 = vmatprep.mubr.bf16.mxu0 %v1560_v0  ;;  %2467 = vmatprep.mubr.bf16.mxu1 %v1560_v0  ;;  %v3923_v58 = vld [vmem:[#allocation8 + $0x3ac] ss:$16 sps:$4 sm:$0xff]   ;;  %v3918_v60 = vld [vmem:[#allocation8 + $0x3a0] ss:$16 sps:$4 sm:$0xff]   ;;  %v3921_v61 = vld [vmem:[#allocation8 + $0x3a8] ss:$16 sps:$4 sm:$0xff]  }
 0x293   :  { %2386 = vmatmul.mubr.bf16.vlgmr.msra.gmra.mrb[4].mxu0 %v1559_v3  ;;  %2468 = vmatmul.mubr.bf16.vlgmr.msra.gmra.mrb[12].mxu1 %v1559_v3  ;;  %v3926_v62 = vld [vmem:[#allocation8 + $0x3c4] ss:$16 sps:$4 sm:$0xff]   ;;  %v3929_v63 = vld [vmem:[#allocation8 + $0x3cc] ss:$16 sps:$4 sm:$0xff]   ;;  %v3924_v0 = vld [vmem:[#allocation8 + $0x3c0] ss:$16 sps:$4 sm:$0xff]  }
 0x294   :  { %2395 = vmatpush1.bf16.msra.mxu0 %v3840_v1  ;;  %2477 = vmatpush1.bf16.msra.mxu1 %v3843_v2  ;;  %v3927_v1 = vld [vmem:[#allocation8 + $0x3c8] ss:$16 sps:$4 sm:$0xff]   ;;  %v3932_v2 = vld [vmem:[#allocation8 + $0x3e4] ss:$16 sps:$4 sm:$0xff]   ;;  %v3935_v3 = vld [vmem:[#allocation8 + $0x3ec] ss:$16 sps:$4 sm:$0xff]  }
 0x295   :  { %2426 = vmatprep.mubr.bf16.mxu0 %v1562_v6  ;;  %2508 = vmatprep.mubr.bf16.mxu1 %v1562_v6  ;;  %v3938_v6 = vld [vmem:[#allocation10 + $0x4] ss:$8 sps:$4 sm:$0xff]  }
 0x296   :  { %2396 = vmatprep.subr.bf16.mxu0 %v3848_v4  ;;  %2478 = vmatprep.subr.bf16.mxu1 %v3851_v5  ;;  %v3930_v4 = vld [vmem:[#allocation8 + $0x3e0] ss:$16 sps:$4 sm:$0xff]   ;;  %v3933_v5 = vld [vmem:[#allocation8 + $0x3e8] ss:$16 sps:$4 sm:$0xff]  }
 0x298   :  { %2397 = vmatpush1.bf16.msra.mxu0 %v3846_v11  ;;  %2479 = vmatpush1.bf16.msra.mxu1 %v3849_v12  ;;  %v3936_v11 = vld [vmem:[#allocation10] ss:$8 sps:$4 sm:$0xff]   ;;  %v1561_v12 = vpack.c.bf16 %v4348_v59, %v4348_v59  ;;  %v3953_v59 = vld [vmem:[#allocation10 + $0x54] ss:$8 sps:$4 sm:$0xff]  }
 0x299   :  { %2398 = vmatprep.subr.bf16.mxu0 %v3854_v13  ;;  %2480 = vmatprep.subr.bf16.mxu1 %v3857_v14  ;;  %v3941_v13 = vld [vmem:[#allocation10 + $0x14] ss:$8 sps:$4 sm:$0xff]   ;;  %v3939_v14 = vld [vmem:[#allocation10 + $0x10] ss:$8 sps:$4 sm:$0xff]  }
 0x29c   :  { %2399 = vmatpush1.bf16.msra.mxu0 %v3852_v16  ;;  %2481 = vmatpush1.bf16.msra.mxu1 %v3855_v17  ;;  %v3944_v16 = vld [vmem:[#allocation10 + $0x24] ss:$8 sps:$4 sm:$0xff]   ;;  %v3942_v17 = vld [vmem:[#allocation10 + $0x20] ss:$8 sps:$4 sm:$0xff]  }
 0x29d   :  { %2400 = vmatprep.subr.bf16.mxu0 %v3860_v19  ;;  %2482 = vmatprep.subr.bf16.mxu1 %v3863_v20  ;;  %v3947_v19 = vld [vmem:[#allocation10 + $0x34] ss:$8 sps:$4 sm:$0xff]   ;;  %v3945_v20 = vld [vmem:[#allocation10 + $0x30] ss:$8 sps:$4 sm:$0xff]  }
 0x2a0   :  { %2401 = vmatpush1.bf16.msra.mxu0 %v3858_v21  ;;  %2483 = vmatpush1.bf16.msra.mxu1 %v3861_v22  ;;  %v3950_v21 = vld [vmem:[#allocation10 + $0x44] ss:$8 sps:$4 sm:$0xff]   ;;  %v3948_v22 = vld [vmem:[#allocation10 + $0x40] ss:$8 sps:$4 sm:$0xff]  }
 0x2a1   :  { %2402 = vmatprep.subr.bf16.mxu0 %v3866_v23  ;;  %2484 = vmatprep.subr.bf16.mxu1 %v3869_v24  ;;  %v3951_v23 = vld [vmem:[#allocation10 + $0x50] ss:$8 sps:$4 sm:$0xff]   ;;  %v3956_v24 = vld [vmem:[#allocation10 + $0x64] ss:$8 sps:$4 sm:$0xff]  }
 0x2a4   :  { %2403 = vmatpush1.bf16.msra.mxu0 %v3864_v25  ;;  %2485 = vmatpush1.bf16.msra.mxu1 %v3867_v26  ;;  %v3954_v25 = vld [vmem:[#allocation10 + $0x60] ss:$8 sps:$4 sm:$0xff]   ;;  %v3959_v26 = vld [vmem:[#allocation10 + $0x74] ss:$8 sps:$4 sm:$0xff]  }
 0x2a5   :  { %2404 = vmatprep.subr.bf16.mxu0 %v3872_v7  ;;  %2486 = vmatprep.subr.bf16.mxu1 %v3875_v27  ;;  %v3957_v7 = vld [vmem:[#allocation10 + $0x70] ss:$8 sps:$4 sm:$0xff]   ;;  %v3962_v27 = vld [vmem:[#allocation10 + $0x84] ss:$8 sps:$4 sm:$0xff]  }
 0x2a8   :  { %2405 = vmatpush1.bf16.msra.mxu0 %v3870_v28  ;;  %2487 = vmatpush1.bf16.msra.mxu1 %v3873_v29  ;;  %v3960_v28 = vld [vmem:[#allocation10 + $0x80] ss:$8 sps:$4 sm:$0xff]   ;;  %v3965_v29 = vld [vmem:[#allocation10 + $0x94] ss:$8 sps:$4 sm:$0xff]  }
 0x2a9   :  { %2406 = vmatprep.subr.bf16.mxu0 %v3878_v30  ;;  %2488 = vmatprep.subr.bf16.mxu1 %v3881_v31  ;;  %v3963_v30 = vld [vmem:[#allocation10 + $0x90] ss:$8 sps:$4 sm:$0xff]   ;;  %v3968_v31 = vld [vmem:[#allocation10 + $0xa4] ss:$8 sps:$4 sm:$0xff]  }
 0x2ac   :  { %2407 = vmatpush1.bf16.msra.mxu0 %v3876_v32  ;;  %2489 = vmatpush1.bf16.msra.mxu1 %v3879_v33  ;;  %v3966_v32 = vld [vmem:[#allocation10 + $0xa0] ss:$8 sps:$4 sm:$0xff]   ;;  %v3971_v33 = vld [vmem:[#allocation10 + $0xb4] ss:$8 sps:$4 sm:$0xff]  }
 0x2ad   :  { %2408 = vmatprep.subr.bf16.mxu0 %v3884_v34  ;;  %2490 = vmatprep.subr.bf16.mxu1 %v3887_v9  ;;  %v3969_v34 = vld [vmem:[#allocation10 + $0xb0] ss:$8 sps:$4 sm:$0xff]   ;;  %v3974_v9 = vld [vmem:[#allocation10 + $0xc4] ss:$8 sps:$4 sm:$0xff]  }
 0x2b0   :  { %2409 = vmatpush1.bf16.msra.mxu0 %v3882_v35  ;;  %2491 = vmatpush1.bf16.msra.mxu1 %v3885_v36  ;;  %v3972_v35 = vld [vmem:[#allocation10 + $0xc0] ss:$8 sps:$4 sm:$0xff]   ;;  %v3977_v36 = vld [vmem:[#allocation10 + $0xd4] ss:$8 sps:$4 sm:$0xff]  }
 0x2b1   :  { %2410 = vmatprep.subr.bf16.mxu0 %v3890_v37  ;;  %2492 = vmatprep.subr.bf16.mxu1 %v3893_v38  ;;  %v3975_v37 = vld [vmem:[#allocation10 + $0xd0] ss:$8 sps:$4 sm:$0xff]   ;;  %v3980_v38 = vld [vmem:[#allocation10 + $0xe4] ss:$8 sps:$4 sm:$0xff]  }
 0x2b4   :  { %2411 = vmatpush1.bf16.msra.mxu0 %v3888_v39  ;;  %2493 = vmatpush1.bf16.msra.mxu1 %v3891_v40  ;;  %v3978_v39 = vld [vmem:[#allocation10 + $0xe0] ss:$8 sps:$4 sm:$0xff]   ;;  %v3983_v40 = vld [vmem:[#allocation10 + $0xf4] ss:$8 sps:$4 sm:$0xff]  }
 0x2b5   :  { %2412 = vmatprep.subr.bf16.mxu0 %v3896_v41  ;;  %2494 = vmatprep.subr.bf16.mxu1 %v3899_v42  ;;  %v3981_v41 = vld [vmem:[#allocation10 + $0xf0] ss:$8 sps:$4 sm:$0xff]   ;;  %v3986_v42 = vld [vmem:[#allocation10 + $0x104] ss:$8 sps:$4 sm:$0xff]  }
 0x2b8   :  { %2413 = vmatpush1.bf16.msra.mxu0 %v3894_v43  ;;  %2495 = vmatpush1.bf16.msra.mxu1 %v3897_v44  ;;  %v4368_v43 = vld [vmem:[%s4404_s6] sm:$0xf] }
 0x2b9   :  { %2414 = vmatprep.subr.bf16.mxu0 %v3902_v45  ;;  %2496 = vmatprep.subr.bf16.mxu1 %v3905_v46  ;;  %v1696_v44 = vrot.slane %v4368_v43, %v4317_v8  ;;  %v1700_v45 = vrot.slane %v4368_v43, %v4325_v10  ;;  %v1708_v46 = vrot.slane %v4368_v43, %v4335_v18 }
 0x2bc   :  { %2415 = vmatpush1.bf16.msra.mxu0 %v3900_v47  ;;  %2497 = vmatpush1.bf16.msra.mxu1 %v3903_v48 }
 0x2bd   :  { %2416 = vmatprep.subr.bf16.mxu0 %v3908_v49  ;;  %2498 = vmatprep.subr.bf16.mxu1 %v3911_v50 }
 0x2c0   :  { %2417 = vmatpush1.bf16.msra.mxu0 %v3906_v51  ;;  %2499 = vmatpush1.bf16.msra.mxu1 %v3909_v52 }
 0x2c1   :  { %2418 = vmatprep.subr.bf16.mxu0 %v3914_v53  ;;  %2500 = vmatprep.subr.bf16.mxu1 %v3917_v54 }
 0x2c4   :  { %2419 = vmatpush1.bf16.msra.mxu0 %v3912_v55  ;;  %2501 = vmatpush1.bf16.msra.mxu1 %v3915_v56 }
 0x2c5   :  { %2420 = vmatprep.subr.bf16.mxu0 %v3920_v57  ;;  %2502 = vmatprep.subr.bf16.mxu1 %v3923_v58 }
 0x2c8   :  { %2421 = vmatpush1.bf16.msra.mxu0 %v3918_v60  ;;  %2503 = vmatpush1.bf16.msra.mxu1 %v3921_v61 }
 0x2c9   :  { %2422 = vmatprep.subr.bf16.mxu0 %v3926_v62  ;;  %2504 = vmatprep.subr.bf16.mxu1 %v3929_v63  ;;  %v3984_v63 = vld [vmem:[#allocation10 + $0x100] ss:$8 sps:$4 sm:$0xff]  }
 0x2cc   :  { %2423 = vmatpush1.bf16.msra.mxu0 %v3924_v0  ;;  %2505 = vmatpush1.bf16.msra.mxu1 %v3927_v1  ;;  %v3989_v1 = vld [vmem:[#allocation10 + $0x114] ss:$8 sps:$4 sm:$0xff]  }
 0x2cd   :  { %2424 = vmatprep.subr.bf16.mxu0 %v3932_v2  ;;  %2506 = vmatprep.subr.bf16.mxu1 %v3935_v3  ;;  %v3987_v2 = vld [vmem:[#allocation10 + $0x110] ss:$8 sps:$4 sm:$0xff]   ;;  %v3992_v3 = vld [vmem:[#allocation10 + $0x124] ss:$8 sps:$4 sm:$0xff]  }
 0x2d0   :  { %2425 = vmatpush1.bf16.msra.mxu0 %v3930_v4  ;;  %2507 = vmatpush1.bf16.msra.mxu1 %v3933_v5  ;;  %v3990_v4 = vld [vmem:[#allocation10 + $0x120] ss:$8 sps:$4 sm:$0xff]   ;;  %v3995_v5 = vld [vmem:[#allocation10 + $0x134] ss:$8 sps:$4 sm:$0xff]  }
 0x2d1   :  { %2921 = vmatprep.subr.bf16.mxu0 %v3938_v6  ;;  %v3993_v6 = vld [vmem:[#allocation10 + $0x130] ss:$8 sps:$4 sm:$0xff]  }
 0x2d3   :  { %2427 = vmatmul.mubr.bf16.vlgmr.msra.gmra.mrb[4].mxu0 %v1561_v12  ;;  %2509 = vmatmul.mubr.bf16.vlgmr.msra.gmra.mrb[12].mxu1 %v1561_v12  ;;  %v3996_v12 = vld [vmem:[#allocation10 + $0x140] ss:$8 sps:$4 sm:$0xff]  }
 0x2d4   :  { %2922 = vmatpush1.bf16.msra.mxu0 %v3936_v11  ;;  %v3998_v11 = vld [vmem:[#allocation10 + $0x144] ss:$8 sps:$4 sm:$0xff]  }
 0x2d5   :  { %2923 = vmatprep.subr.bf16.mxu0 %v3941_v13  ;;  %v4001_v13 = vld [vmem:[#allocation10 + $0x154] ss:$8 sps:$4 sm:$0xff]  }
 0x2d8   :  { %2924 = vmatpush1.bf16.msra.mxu0 %v3939_v14  ;;  %v3999_v14 = vld [vmem:[#allocation10 + $0x150] ss:$8 sps:$4 sm:$0xff]  }
 0x2d9   :  { %2925 = vmatprep.subr.bf16.mxu0 %v3944_v16  ;;  %v4004_v16 = vld [vmem:[#allocation10 + $0x164] ss:$8 sps:$4 sm:$0xff]  }
 0x2dc   :  { %2926 = vmatpush1.bf16.msra.mxu0 %v3942_v17  ;;  %v4002_v17 = vld [vmem:[#allocation10 + $0x160] ss:$8 sps:$4 sm:$0xff]  }
 0x2dd   :  { %2927 = vmatprep.subr.bf16.mxu0 %v3947_v19  ;;  %v4007_v19 = vld [vmem:[#allocation10 + $0x174] ss:$8 sps:$4 sm:$0xff]  }
 0x2e0   :  { %2928 = vmatpush1.bf16.msra.mxu0 %v3945_v20  ;;  %v4005_v20 = vld [vmem:[#allocation10 + $0x170] ss:$8 sps:$4 sm:$0xff]  }
 0x2e1   :  { %2929 = vmatprep.subr.bf16.mxu0 %v3950_v21  ;;  %v4010_v21 = vld [vmem:[#allocation10 + $0x184] ss:$8 sps:$4 sm:$0xff]  }
 0x2e4   :  { %2930 = vmatpush1.bf16.msra.mxu0 %v3948_v22  ;;  %v4008_v22 = vld [vmem:[#allocation10 + $0x180] ss:$8 sps:$4 sm:$0xff]  }
 0x2e5   :  { %2931 = vmatprep.subr.bf16.mxu0 %v3953_v59  ;;  %v4013_v59 = vld [vmem:[#allocation10 + $0x194] ss:$8 sps:$4 sm:$0xff]  }
 0x2e8   :  { %2932 = vmatpush1.bf16.msra.mxu0 %v3951_v23  ;;  %v4011_v23 = vld [vmem:[#allocation10 + $0x190] ss:$8 sps:$4 sm:$0xff]  }
 0x2e9   :  { %2933 = vmatprep.subr.bf16.mxu0 %v3956_v24  ;;  %v4016_v24 = vld [vmem:[#allocation10 + $0x1a4] ss:$8 sps:$4 sm:$0xff]  }
 0x2ec   :  { %2934 = vmatpush1.bf16.msra.mxu0 %v3954_v25  ;;  %v4014_v25 = vld [vmem:[#allocation10 + $0x1a0] ss:$8 sps:$4 sm:$0xff]  }
 0x2ed   :  { %2935 = vmatprep.subr.bf16.mxu0 %v3959_v26  ;;  %v4019_v26 = vld [vmem:[#allocation10 + $0x1b4] ss:$8 sps:$4 sm:$0xff]  }
 0x2f0   :  { %2936 = vmatpush1.bf16.msra.mxu0 %v3957_v7  ;;  %v4017_v7 = vld [vmem:[#allocation10 + $0x1b0] ss:$8 sps:$4 sm:$0xff]  }
 0x2f1   :  { %2937 = vmatprep.subr.bf16.mxu0 %v3962_v27  ;;  %v4022_v27 = vld [vmem:[#allocation10 + $0x1c4] ss:$8 sps:$4 sm:$0xff]  }
 0x2f4   :  { %2938 = vmatpush1.bf16.msra.mxu0 %v3960_v28  ;;  %v4020_v28 = vld [vmem:[#allocation10 + $0x1c0] ss:$8 sps:$4 sm:$0xff]  }
 0x2f5   :  { %2939 = vmatprep.subr.bf16.mxu0 %v3965_v29  ;;  %v4025_v29 = vld [vmem:[#allocation10 + $0x1d4] ss:$8 sps:$4 sm:$0xff]  }
 0x2f8   :  { %2940 = vmatpush1.bf16.msra.mxu0 %v3963_v30  ;;  %v4023_v30 = vld [vmem:[#allocation10 + $0x1d0] ss:$8 sps:$4 sm:$0xff]  }
 0x2f9   :  { %2941 = vmatprep.subr.bf16.mxu0 %v3968_v31  ;;  %v1704_v31 = vrot.slane %v4368_v43, %v4332_v15 }
 0x2fc   :  { %2942 = vmatpush1.bf16.msra.mxu0 %v3966_v32  ;;  %v4028_v32 = vld [vmem:[#allocation10 + $0x1e4] ss:$8 sps:$4 sm:$0xff]  }
 0x2fd   :  { %2943 = vmatprep.subr.bf16.mxu0 %v3971_v33  ;;  %v4026_v33 = vld [vmem:[#allocation10 + $0x1e0] ss:$8 sps:$4 sm:$0xff]  }
 0x300   :  { %2944 = vmatpush1.bf16.msra.mxu0 %v3969_v34 }
 0x301   :  { %2945 = vmatprep.subr.bf16.mxu0 %v3974_v9  ;;  %v4031_v9 = vld [vmem:[#allocation10 + $0x1f4] ss:$8 sps:$4 sm:$0xff]  }
 0x304   :  { %2946 = vmatpush1.bf16.msra.mxu0 %v3972_v35  ;;  %v4029_v35 = vld [vmem:[#allocation10 + $0x1f0] ss:$8 sps:$4 sm:$0xff]  }
 0x305   :  { %2947 = vmatprep.subr.bf16.mxu0 %v3977_v36 }
 0x308   :  { %2948 = vmatpush1.bf16.msra.mxu0 %v3975_v37 }
 0x309   :  { %2949 = vmatprep.subr.bf16.mxu0 %v3980_v38  ;;  %v2589_v38 = vld [vmem:[%s4406_s8] sm:$0x3] }
 0x30a   :  { %v2594_v15 = vrot.slane %v2589_v38, %v4317_v8 }
 0x30c   :  { %2950 = vmatpush1.bf16.msra.mxu0 %v3978_v39  ;;  %v2598_v39 = vrot.slane %v2589_v38, %v4325_v10 }
 0x30d   :  { %2951 = vmatprep.subr.bf16.mxu0 %v3983_v40 }
 0x310   :  { %2952 = vmatpush1.bf16.msra.mxu0 %v3981_v41 }
 0x311   :  { %2962 = vmatprep.subr.bf16.mxu0 %v3986_v42 }
 0x3a6   :  { %v2428_v47 = vpop.f32.mrb[4].mxu0  ;;  %v4376_v48 = vpop.f32.mrb[12].mxu1 }
 0x3a7   :  { %v3420_v49 = vadd.f32 %v2428_v47, %v1696_v44  ;;  %v2430_v50 = vpop.f32.mrb[5].mxu0  ;;  %v2512_v51 = vpop.f32.mrb[13].mxu1  ;;  %v3422_v34 = vadd.f32 %v4376_v48, %v1704_v31 }
 0x3a8   :  { %v3421_v52 = vadd.f32 %v2430_v50, %v1700_v45  ;;  %v3423_v53 = vadd.f32 %v2512_v51, %v1708_v46  ;;  %v2432_v54 = vpop.f32.mrb[6].mxu0  ;;  %v2514_v55 = vpop.f32.mrb[14].mxu1 }
 0x3a9   :  { %v2517_v56 = vmax.f32 %v3420_v49, 0.0  ;;  %v2433_v57 = vpop.f32.mrb[7].mxu0  ;;  %v2515_v58 = vpop.f32.mrb[15].mxu1  ;;  %v2519_v36 = vmax.f32 %v3422_v34, 0.0 }
 0x3aa   :  { %v2518_v60 = vmax.f32 %v3421_v52, 0.0  ;;  %v2520_v61 = vmax.f32 %v3423_v53, 0.0 }
 0x3ab   :  { %v2521_v0 = vpack.c.bf16 %v2517_v56, %v2517_v56  ;;  %v2523_v37 = vpack.c.bf16 %v2519_v36, %v2519_v36 }
 0x3ac   :  { %v2522_v62 = vpack.c.bf16 %v2518_v60, %v2518_v60  ;;  %v2524_v18 = vpack.c.bf16 %v2520_v61, %v2520_v61 }
 0x3ae   :  { %2953 = vmatprep.mubr.bf16.mxu0 %v2522_v62 }
 0x3af   :  { %2954 = vmatmul.mubr.bf16.vlgmr.msra.gmra.mrb[8].mxu0 %v2521_v0 }
 0x3b0   :  { %2963 = vmatpush1.bf16.msra.mxu0 %v3984_v63  ;;  %2994 = vmatprep.mubr.bf16.mxu0 %v2524_v18 }
 0x3b1   :  { %2964 = vmatprep.subr.bf16.mxu0 %v3989_v1 }
 0x3b4   :  { %2965 = vmatpush1.bf16.msra.mxu0 %v3987_v2 }
 0x3b5   :  { %2966 = vmatprep.subr.bf16.mxu0 %v3992_v3 }
 0x3b8   :  { %2967 = vmatpush1.bf16.msra.mxu0 %v3990_v4 }
 0x3b9   :  { %2968 = vmatprep.subr.bf16.mxu0 %v3995_v5 }
 0x3bc   :  { %2969 = vmatpush1.bf16.msra.mxu0 %v3993_v6 }
 0x3bd   :  { %2970 = vmatprep.subr.bf16.mxu0 %v3998_v11 }
 0x3c0   :  { %2971 = vmatpush1.bf16.msra.mxu0 %v3996_v12 }
 0x3c1   :  { %2972 = vmatprep.subr.bf16.mxu0 %v4001_v13 }
 0x3c4   :  { %2973 = vmatpush1.bf16.msra.mxu0 %v3999_v14 }
 0x3c5   :  { %2974 = vmatprep.subr.bf16.mxu0 %v4004_v16 }
 0x3c8   :  { %2975 = vmatpush1.bf16.msra.mxu0 %v4002_v17 }
 0x3c9   :  { %2976 = vmatprep.subr.bf16.mxu0 %v4007_v19 }
 0x3cc   :  { %2977 = vmatpush1.bf16.msra.mxu0 %v4005_v20 }
 0x3cd   :  { %2978 = vmatprep.subr.bf16.mxu0 %v4010_v21 }
 0x3d0   :  { %2979 = vmatpush1.bf16.msra.mxu0 %v4008_v22 }
 0x3d1   :  { %2980 = vmatprep.subr.bf16.mxu0 %v4013_v59 }
 0x3d4   :  { %2981 = vmatpush1.bf16.msra.mxu0 %v4011_v23 }
 0x3d5   :  { %2982 = vmatprep.subr.bf16.mxu0 %v4016_v24 }
 0x3d8   :  { %2983 = vmatpush1.bf16.msra.mxu0 %v4014_v25 }
 0x3d9   :  { %2984 = vmatprep.subr.bf16.mxu0 %v4019_v26 }
 0x3dc   :  { %2985 = vmatpush1.bf16.msra.mxu0 %v4017_v7 }
 0x3dd   :  { %2986 = vmatprep.subr.bf16.mxu0 %v4022_v27 }
 0x3e0   :  { %2987 = vmatpush1.bf16.msra.mxu0 %v4020_v28 }
 0x3e1   :  { %2988 = vmatprep.subr.bf16.mxu0 %v4025_v29 }
 0x3e4   :  { %2989 = vmatpush1.bf16.msra.mxu0 %v4023_v30 }
 0x3e5   :  { %2990 = vmatprep.subr.bf16.mxu0 %v4028_v32 }
 0x3e8   :  { %2991 = vmatpush1.bf16.msra.mxu0 %v4026_v33 }
 0x3e9   :  { %2992 = vmatprep.subr.bf16.mxu0 %v4031_v9 }
 0x3ec   :  { %2993 = vmatpush1.bf16.msra.mxu0 %v4029_v35 }
 0x3ef   :  { %2995 = vmatmul.mubr.bf16.vlgmr.msra.gmra.mrb[8].mxu0 %v2523_v37 }
 0x4c2   :  { %v2996_v40 = vpop.f32.mrb[8].mxu0 }
 0x4c3   :  { %v3424_v41 = vadd.f32 %v2996_v40, %v2594_v15  ;;  %v2998_v42 = vpop.f32.mrb[9].mxu0 }
 0x4c4   :  { %v3425_v43 = vadd.f32 %v2998_v42, %v2598_v39  ;;  %v3000_v44 = vpop.f32.mrb[10].mxu0 }
 0x4c5   :  { %v3003_v45 = vmax.f32 %v3424_v41, 0.0  ;;  %v3001_v46 = vpop.f32.mrb[11].mxu0 }
 0x4c6   :  { %v3004_v47 = vmax.f32 %v3425_v43, 0.0 }
 0x4c7   :  { %3005 = vst [vmem:[#allocation11] sm:$0xff] %v3003_v45 }
 0x4c8   :  { %3006 = vst [vmem:[#allocation11 + $0x8] sm:$0xff] %v3004_v47 }
 0x4c9   :  { %4153 = shalt.err (!%p4150_p2)
}
 0x4ca   :  { %s4154_s29 = scalar_lea.hbm %s4407_s9, 256 }
 0x4cb   :  { %p4155_p3 = scmp.ne.s32.totalorder %s4407_s9, %s4154_s29  ;;  %p4158_p4 = scmp.lt.u32.totalorder %s4154_s29, %s4407_s9 }
 0x4cd   :  { %p4160_p5 = pnand %p4158_p4, %p4155_p3 }
 0x4cf   :  { %4163 = shalt.err (!%p4160_p5)
}
 0x4d0   :  { %3020 = dma.vmem_to_hbm [thread:$0]  %s3018_s25, 256, %s4407_s9, [#allocation4]  }
 0x4d1   :  { %4170 = dma.done.wait [#allocation4], 256  }
 0x4d2   :  { %4171 = vsyncadd [#allocation4], 4294967040 }
 0x4d3   :  { %3028 = vsyncpa [#allocation3], 1 }
 0x4d4   :  { %3029 = vsyncpa [#allocation6], 1 }
 0x4d5   :  { %3030 = vsyncpa [#allocation9], 1 }
 0x4d6   :  { %3031 = vsyncpa [#allocation4], 1 }

</bundles_post_ra>
